<compile_context>
chip_gen: v7x
topology: tpu7x:2x2x1
jax: 0.10.0
libtpu: 0.0.40
codegen_flags: <defaults>
</compile_context>

<pallas_src>
import jax
import jax.numpy as jnp
from jax import lax
from jax.experimental import pallas as pl
from jax.experimental.pallas import tpu as pltpu

H, W = 64, 32          # input spatial dims implied by fc = Linear(32*16*8, 2)
C1, C2 = 16, 32
NUM_CLASSES = 2


# ------------------------------ fused kernel --------------------------------

def _fused_cnn_kernel(x6_ref, w1p_ref, b1p_ref, w2p_ref, b2p_ref,
                      wfc_ref, bfc_ref, o_ref):
    f32 = jnp.float32

    # ---- conv1 + bias + ReLU (halo-packed output) ---------------------------
    # x6_ref[0]: (66, 8, 10) with x6[h, u, s] = xpadw[h, 4u + s]
    # acc1 row = i*8 + u ; lane = blk*16 + c with blk = ee + 4*odd encoding
    # conv1 output column j = 4u + 2*ee - 2 + odd  (ee in 0..3, odd in 0..1).
    x6 = x6_ref[0]
    acc1 = jnp.zeros((512, 128), f32)
    for kh in range(3):
        lhs = x6[kh:kh + 64].reshape(512, 10)
        acc1 = acc1 + jnp.dot(lhs, w1p_ref[kh], preferred_element_type=f32)
    h1 = jnp.maximum(acc1 + b1p_ref[...], 0.0)             # (512, 128)

    # ---- pool1 (2x2 / 2), keeping a 1-column halo per group ------------------
    r1 = h1.reshape(32, 2, 8, 128)
    g1 = jnp.maximum(r1[:, 0], r1[:, 1])                   # max over row pair
    p1 = jnp.maximum(g1[:, :, 0:64], g1[:, :, 64:128])     # max over col pair
    # p1[a, v, ee*16 + c] = pool1[c, a, 2v + ee - 1]  (halo: ee=0 / ee=3)
    # Out-of-image halo entries (col -1 at v=0, col 16 at v=7) must be the
    # conv2 zero padding -> mask them.
    vio = lax.broadcasted_iota(jnp.int32, p1.shape, 1)
    lio = lax.broadcasted_iota(jnp.int32, p1.shape, 2)
    p1 = jnp.where(((vio == 0) & (lio < 16)) | ((vio == 7) & (lio >= 48)),
                   0.0, p1)

    # ---- conv2 + bias + ReLU (banded weights: no shifts needed) --------------
    zrow = jnp.zeros((1, 8, 64), f32)
    pp = jnp.concatenate([zrow, p1, zrow], axis=0)          # (34, 8, 64) vert pad
    # acc2 row = i2*8 + t ; lane = e'*32 + c' ; conv2 output col j2 = 2t + e'
    acc2 = jnp.zeros((256, 64), f32)
    for kh in range(3):
        lhs = pp[kh:kh + 32].reshape(256, 64)
        acc2 = acc2 + jnp.dot(lhs, w2p_ref[kh], preferred_element_type=f32)
    h2 = jnp.maximum(acc2 + b2p_ref[...], 0.0)              # (256, 64)

    # ---- pool2 ---------------------------------------------------------------
    r2 = h2.reshape(16, 2, 8, 64)
    g2 = jnp.maximum(r2[:, 0], r2[:, 1])
    p2 = jnp.maximum(g2[:, :, 0:32], g2[:, :, 32:64])       # (16, 8, 32)
    p2r = p2.reshape(128, 32)                               # row = d*8 + t, lane = c'

    # ---- fc (flatten order folded into wfc packing, pure f32 on VPU) ---------
    s0 = jnp.sum(p2r * wfc_ref[0])
    s1 = jnp.sum(p2r * wfc_ref[1])
    nidx = lax.broadcasted_iota(jnp.int32, (1, NUM_CLASSES), 1)
    o_ref[0] = jnp.where(nidx == 0, s0, s1) + bfc_ref[...]


# -------------------------------- wrapper ------------------------------------

def simple_cnn_forward(x_nchw, params):
    B = x_nchw.shape[0]
    # Tiny raw-input re-layout: x6[b, h, u, s] = xpadw[b, h, 4u + s]
    # (xpadw = image padded by 1 row each side and 3 cols each side).
    x2 = x_nchw[:, 0]                                       # (B, 64, 32)
    xpw = jnp.pad(x2, ((0, 0), (1, 1), (3, 3)))             # (B, 66, 38)
    cols = [xpw[:, :, s::4][:, :, :8] for s in range(10)]
    x6 = jnp.stack(cols, axis=-1)                           # (B, 66, 8, 10)

    out = pl.pallas_call(
        _fused_cnn_kernel,
        out_shape=jax.ShapeDtypeStruct((B, 1, NUM_CLASSES), jnp.float32),
        grid=(B,),
        in_specs=[
            pl.BlockSpec((1, H + 2, 8, 10), lambda b: (b, 0, 0, 0)),   # x6
            pl.BlockSpec((3, 10, 128), lambda b: (0, 0, 0)),           # w1 packed
            pl.BlockSpec((1, 128), lambda b: (0, 0)),                  # b1 packed
            pl.BlockSpec((3, 64, 64), lambda b: (0, 0, 0)),            # w2 packed
            pl.BlockSpec((1, 64), lambda b: (0, 0)),                   # b2 packed
            pl.BlockSpec((NUM_CLASSES, 128, 32), lambda b: (0, 0, 0)), # fc packed
            pl.BlockSpec((1, NUM_CLASSES), lambda b: (0, 0)),          # fc bias
        ],
        out_specs=pl.BlockSpec((1, 1, NUM_CLASSES), lambda b: (b, 0, 0)),
        compiler_params=pltpu.CompilerParams(dimension_semantics=("parallel",)),
    )(x6, params["w1p"], params["b1p"], params["w2p"], params["b2p"],
      params["wfcp"], params["bfc2"])
    return out.reshape(B, NUM_CLASSES)


# --------------------------- reference (pure JAX) ----------------------------

def reference_forward(x, w1, b1, w2, b2, wfc, bfc):
    hp = lax.Precision.HIGHEST
    y = lax.conv_general_dilated(x, w1, (1, 1), ((1, 1), (1, 1)),
                                 dimension_numbers=("NCHW", "OIHW", "NCHW"),
                                 precision=hp)
    y = jnp.maximum(y + b1[None, :, None, None], 0.0)
    y = lax.reduce_window(y, -jnp.inf, lax.max, (1, 1, 2, 2), (1, 1, 2, 2), "VALID")
    y = lax.conv_general_dilated(y, w2, (1, 1), ((1, 1), (1, 1)),
                                 dimension_numbers=("NCHW", "OIHW", "NCHW"),
                                 precision=hp)
    y = jnp.maximum(y + b2[None, :, None, None], 0.0)
    y = lax.reduce_window(y, -jnp.inf, lax.max, (1, 1, 2, 2), (1, 1, 2, 2), "VALID")
    y = y.reshape(y.shape[0], -1)
    return jnp.dot(y, wfc.T, precision=hp) + bfc


# ----------------------------- params / packing -------------------------------

def make_params(key):
    ks = jax.random.split(key, 6)
    # PyTorch-convention shapes (deterministic synthetic init)
    w1 = 0.2 * jax.random.normal(ks[0], (C1, 1, 3, 3), jnp.float32)    # OIHW
    b1 = 0.1 * jax.random.normal(ks[1], (C1,), jnp.float32)
    w2 = 0.1 * jax.random.normal(ks[2], (C2, C1, 3, 3), jnp.float32)   # OIHW
    b2 = 0.1 * jax.random.normal(ks[3], (C2,), jnp.float32)
    wfc = 0.02 * jax.random.normal(ks[4], (NUM_CLASSES, C2 * 16 * 8), jnp.float32)
    bfc = 0.1 * jax.random.normal(ks[5], (NUM_CLASSES,), jnp.float32)

    # conv1 packing: output col j = 4u + r, r in [-2, 5] (2-col halo each side);
    # lane block blk = (r+2)//2 + 4*((r+2)%2); kernel lhs s = r + 2 + kw.
    w1p = jnp.zeros((3, 10, 128), jnp.float32)
    for r in range(-2, 6):
        blk = (r + 2) // 2 + 4 * ((r + 2) % 2)
        for kw in range(3):
            s = r + 2 + kw
            w1p = w1p.at[:, s, blk * 16:(blk + 1) * 16].set(
                jnp.transpose(w1[:, 0, :, kw]))              # (kh, cout=16) -> (3,16)
    b1p = jnp.tile(b1, 8).reshape(1, 128)

    # conv2 packing: banded (64,64) weight per kh.
    # lhs lane = ee*16 + c provides pool1 col 2t + ee - 1;
    # out lane = e'*32 + c' is conv2 col 2t + e'; tap kw = ee - e' in {0,1,2}.
    w2p = jnp.zeros((3, 64, 64), jnp.float32)
    for kh in range(3):
        for ee in range(4):
            for ep in range(2):
                kw = ee - ep
                if 0 <= kw <= 2:
                    w2p = w2p.at[kh, ee * 16:(ee + 1) * 16,
                                 ep * 32:(ep + 1) * 32].set(
                        jnp.transpose(w2[:, :, kh, kw]))     # (cin=16, cout=32)
    b2p = jnp.tile(b2, 2).reshape(1, 64)

    # fc packing: kernel feature row = d*8 + t, lane = c'  (== torch NCHW flatten)
    wfcp = wfc.reshape(NUM_CLASSES, C2, 128).transpose(0, 2, 1)   # (2, 128, 32)
    bfc2 = bfc.reshape(1, NUM_CLASSES)

    torch_params = (w1, b1, w2, b2, wfc, bfc)
    pallas_params = dict(w1p=w1p, b1p=b1p, w2p=w2p, b2p=b2p, wfcp=wfcp, bfc2=bfc2)
    return torch_params, pallas_params


# ---------------------------------- main --------------------------------------

if __name__ == "__main__":
    key = jax.random.PRNGKey(0)
    k_x, k_p = jax.random.split(key)

    B = 2
    x = jax.random.normal(k_x, (B, 1, H, W), jnp.float32)   # (2, 1, 64, 32)
    torch_params, pallas_params = make_params(k_p)

    fwd = jax.jit(simple_cnn_forward)
    out = jax.block_until_ready(fwd(x, pallas_params))
    assert out.shape == (B, NUM_CLASSES) and out.dtype == jnp.float32

    ref = reference_forward(x, *torch_params)
    if not jnp.allclose(out, ref, rtol=2e-2, atol=2e-2):
        raise AssertionError(
            f"Pallas/reference mismatch, max abs diff = {jnp.max(jnp.abs(out - ref))}")

    print("KERNEL_OK")
</pallas_src>

<mosaic_0001>
module attributes {stable_mosaic.version = 11 : i64} {
  func.func @_fused_cnn_kernel(%arg0: i32, %arg1: memref<1x66x8x10xf32, #tpu.memory_space<vmem>>, %arg2: memref<3x10x128xf32, #tpu.memory_space<vmem>>, %arg3: memref<1x128xf32, #tpu.memory_space<vmem>>, %arg4: memref<3x64x64xf32, #tpu.memory_space<vmem>>, %arg5: memref<1x64xf32, #tpu.memory_space<vmem>>, %arg6: memref<2x128x32xf32, #tpu.memory_space<vmem>>, %arg7: memref<1x2xf32, #tpu.memory_space<vmem>>, %arg8: memref<1x1x2xf32, #tpu.memory_space<vmem>>) attributes {dimension_semantics = [#tpu.dimension_semantics<parallel>], iteration_bounds = array<i64: 2>, scalar_prefetch = 0 : i64, scratch_operands = 0 : i64, tpu.core_type = #tpu.core_type<tc>, window_params = [{transform_indices = @transform_0, window_bounds = array<i64: 1, 66, 8, 10>}, {pipeline_mode = #tpu.pipeline_mode<synchronous>, transform_indices = @transform_1, window_bounds = array<i64: 3, 10, 128>}, {pipeline_mode = #tpu.pipeline_mode<synchronous>, transform_indices = @transform_2, window_bounds = array<i64: 1, 128>}, {pipeline_mode = #tpu.pipeline_mode<synchronous>, transform_indices = @transform_3, window_bounds = array<i64: 3, 64, 64>}, {pipeline_mode = #tpu.pipeline_mode<synchronous>, transform_indices = @transform_4, window_bounds = array<i64: 1, 64>}, {pipeline_mode = #tpu.pipeline_mode<synchronous>, transform_indices = @transform_5, window_bounds = array<i64: 2, 128, 32>}, {pipeline_mode = #tpu.pipeline_mode<synchronous>, transform_indices = @transform_6, window_bounds = array<i64: 1, 2>}, {transform_indices = @transform_7, window_bounds = array<i64: 1, 1, 2>}]} {
    %c0 = arith.constant 0 : index
    %c0_0 = arith.constant 0 : index
    %c0_1 = arith.constant 0 : index
    %c0_2 = arith.constant 0 : index
    %0 = vector.load %arg1[%c0, %c0_0, %c0_1, %c0_2] : memref<1x66x8x10xf32, #tpu.memory_space<vmem>>, vector<1x66x8x10xf32>
    %1 = vector.shape_cast %0 : vector<1x66x8x10xf32> to vector<66x8x10xf32>
    %cst = arith.constant 0.000000e+00 : f32
    %2 = vector.broadcast %cst : f32 to vector<512x128xf32>
    %3 = vector.extract_strided_slice %1 {offsets = [0, 0, 0], sizes = [64, 8, 10], strides = [1, 1, 1]} : vector<66x8x10xf32> to vector<64x8x10xf32>
    %4 = vector.shape_cast %3 : vector<64x8x10xf32> to vector<512x10xf32>
    %c0_3 = arith.constant 0 : index
    %c0_4 = arith.constant 0 : index
    %c0_5 = arith.constant 0 : index
    %5 = vector.load %arg2[%c0_3, %c0_4, %c0_5] : memref<3x10x128xf32, #tpu.memory_space<vmem>>, vector<1x10x128xf32>
    %6 = vector.shape_cast %5 : vector<1x10x128xf32> to vector<10x128xf32>
    %cst_6 = arith.constant dense<0.000000e+00> : vector<512x128xf32>
    %7 = tpu.matmul %4, %6, %cst_6 {dimension_numbers = #tpu.dot_dimension_numbers<[1], [0], [0], [1], [0, 0, 1, 1], [], []>} : vector<512x10xf32>, vector<10x128xf32>, vector<512x128xf32> -> vector<512x128xf32>
    %8 = arith.addf %2, %7 : vector<512x128xf32>
    %9 = vector.extract_strided_slice %1 {offsets = [1, 0, 0], sizes = [64, 8, 10], strides = [1, 1, 1]} : vector<66x8x10xf32> to vector<64x8x10xf32>
    %10 = vector.shape_cast %9 : vector<64x8x10xf32> to vector<512x10xf32>
    %c1 = arith.constant 1 : index
    %c0_7 = arith.constant 0 : index
    %c0_8 = arith.constant 0 : index
    %11 = vector.load %arg2[%c1, %c0_7, %c0_8] : memref<3x10x128xf32, #tpu.memory_space<vmem>>, vector<1x10x128xf32>
    %12 = vector.shape_cast %11 : vector<1x10x128xf32> to vector<10x128xf32>
    %cst_9 = arith.constant dense<0.000000e+00> : vector<512x128xf32>
    %13 = tpu.matmul %10, %12, %cst_9 {dimension_numbers = #tpu.dot_dimension_numbers<[1], [0], [0], [1], [0, 0, 1, 1], [], []>} : vector<512x10xf32>, vector<10x128xf32>, vector<512x128xf32> -> vector<512x128xf32>
    %14 = arith.addf %8, %13 : vector<512x128xf32>
    %15 = vector.extract_strided_slice %1 {offsets = [2, 0, 0], sizes = [64, 8, 10], strides = [1, 1, 1]} : vector<66x8x10xf32> to vector<64x8x10xf32>
    %16 = vector.shape_cast %15 : vector<64x8x10xf32> to vector<512x10xf32>
    %c2 = arith.constant 2 : index
    %c0_10 = arith.constant 0 : index
    %c0_11 = arith.constant 0 : index
    %17 = vector.load %arg2[%c2, %c0_10, %c0_11] : memref<3x10x128xf32, #tpu.memory_space<vmem>>, vector<1x10x128xf32>
    %18 = vector.shape_cast %17 : vector<1x10x128xf32> to vector<10x128xf32>
    %cst_12 = arith.constant dense<0.000000e+00> : vector<512x128xf32>
    %19 = tpu.matmul %16, %18, %cst_12 {dimension_numbers = #tpu.dot_dimension_numbers<[1], [0], [0], [1], [0, 0, 1, 1], [], []>} : vector<512x10xf32>, vector<10x128xf32>, vector<512x128xf32> -> vector<512x128xf32>
    %20 = arith.addf %14, %19 : vector<512x128xf32>
    %c0_13 = arith.constant 0 : index
    %c0_14 = arith.constant 0 : index
    %21 = vector.load %arg3[%c0_13, %c0_14] : memref<1x128xf32, #tpu.memory_space<vmem>>, vector<1x128xf32>
    %22 = vector.broadcast %21 : vector<1x128xf32> to vector<512x128xf32>
    %23 = arith.addf %20, %22 : vector<512x128xf32>
    %cst_15 = arith.constant 0.000000e+00 : f32
    %24 = vector.broadcast %cst_15 : f32 to vector<512x128xf32>
    %25 = arith.maximumf %23, %24 : vector<512x128xf32>
    %26 = vector.shape_cast %25 : vector<512x128xf32> to vector<32x2x8x128xf32>
    %27 = vector.extract_strided_slice %26 {offsets = [0, 0, 0, 0], sizes = [32, 1, 8, 128], strides = [1, 1, 1, 1]} : vector<32x2x8x128xf32> to vector<32x1x8x128xf32>
    %28 = vector.shape_cast %27 : vector<32x1x8x128xf32> to vector<32x8x128xf32>
    %29 = vector.extract_strided_slice %26 {offsets = [0, 1, 0, 0], sizes = [32, 1, 8, 128], strides = [1, 1, 1, 1]} : vector<32x2x8x128xf32> to vector<32x1x8x128xf32>
    %30 = vector.shape_cast %29 : vector<32x1x8x128xf32> to vector<32x8x128xf32>
    %31 = arith.maximumf %28, %30 : vector<32x8x128xf32>
    %32 = vector.extract_strided_slice %31 {offsets = [0, 0, 0], sizes = [32, 8, 64], strides = [1, 1, 1]} : vector<32x8x128xf32> to vector<32x8x64xf32>
    %33 = vector.extract_strided_slice %31 {offsets = [0, 0, 64], sizes = [32, 8, 64], strides = [1, 1, 1]} : vector<32x8x128xf32> to vector<32x8x64xf32>
    %34 = arith.maximumf %32, %33 : vector<32x8x64xf32>
    %35 = tpu.iota {dimensions = array<i32: 1>} : vector<32x8x64xi32>
    %36 = tpu.iota {dimensions = array<i32: 2>} : vector<32x8x64xi32>
    %c0_i32 = arith.constant 0 : i32
    %37 = vector.broadcast %c0_i32 : i32 to vector<32x8x64xi32>
    %38 = arith.cmpi eq, %35, %37 : vector<32x8x64xi32>
    %c16_i32 = arith.constant 16 : i32
    %39 = vector.broadcast %c16_i32 : i32 to vector<32x8x64xi32>
    %40 = arith.cmpi slt, %36, %39 : vector<32x8x64xi32>
    %41 = arith.andi %38, %40 : vector<32x8x64xi1>
    %c7_i32 = arith.constant 7 : i32
    %42 = vector.broadcast %c7_i32 : i32 to vector<32x8x64xi32>
    %43 = arith.cmpi eq, %35, %42 : vector<32x8x64xi32>
    %c48_i32 = arith.constant 48 : i32
    %44 = vector.broadcast %c48_i32 : i32 to vector<32x8x64xi32>
    %45 = arith.cmpi sge, %36, %44 : vector<32x8x64xi32>
    %46 = arith.andi %43, %45 : vector<32x8x64xi1>
    %47 = arith.ori %41, %46 : vector<32x8x64xi1>
    %cst_16 = arith.constant 0.000000e+00 : f32
    %48 = vector.broadcast %cst_16 : f32 to vector<32x8x64xf32>
    %49 = arith.select %47, %48, %34 : vector<32x8x64xi1>, vector<32x8x64xf32>
    %cst_17 = arith.constant 0.000000e+00 : f32
    %50 = vector.broadcast %cst_17 : f32 to vector<1x8x64xf32>
    %51 = tpu.concatenate %50, %49, %50 in 0 : vector<1x8x64xf32>, vector<32x8x64xf32>, vector<1x8x64xf32> -> vector<34x8x64xf32>
    %cst_18 = arith.constant 0.000000e+00 : f32
    %52 = vector.broadcast %cst_18 : f32 to vector<256x64xf32>
    %53 = vector.extract_strided_slice %51 {offsets = [0, 0, 0], sizes = [32, 8, 64], strides = [1, 1, 1]} : vector<34x8x64xf32> to vector<32x8x64xf32>
    %54 = vector.shape_cast %53 : vector<32x8x64xf32> to vector<256x64xf32>
    %c0_19 = arith.constant 0 : index
    %c0_20 = arith.constant 0 : index
    %c0_21 = arith.constant 0 : index
    %55 = vector.load %arg4[%c0_19, %c0_20, %c0_21] : memref<3x64x64xf32, #tpu.memory_space<vmem>>, vector<1x64x64xf32>
    %56 = vector.shape_cast %55 : vector<1x64x64xf32> to vector<64x64xf32>
    %cst_22 = arith.constant dense<0.000000e+00> : vector<256x64xf32>
    %57 = tpu.matmul %54, %56, %cst_22 {dimension_numbers = #tpu.dot_dimension_numbers<[1], [0], [0], [1], [0, 0, 1, 1], [], []>} : vector<256x64xf32>, vector<64x64xf32>, vector<256x64xf32> -> vector<256x64xf32>
    %58 = arith.addf %52, %57 : vector<256x64xf32>
    %59 = vector.extract_strided_slice %51 {offsets = [1, 0, 0], sizes = [32, 8, 64], strides = [1, 1, 1]} : vector<34x8x64xf32> to vector<32x8x64xf32>
    %60 = vector.shape_cast %59 : vector<32x8x64xf32> to vector<256x64xf32>
    %c1_23 = arith.constant 1 : index
    %c0_24 = arith.constant 0 : index
    %c0_25 = arith.constant 0 : index
    %61 = vector.load %arg4[%c1_23, %c0_24, %c0_25] : memref<3x64x64xf32, #tpu.memory_space<vmem>>, vector<1x64x64xf32>
    %62 = vector.shape_cast %61 : vector<1x64x64xf32> to vector<64x64xf32>
    %cst_26 = arith.constant dense<0.000000e+00> : vector<256x64xf32>
    %63 = tpu.matmul %60, %62, %cst_26 {dimension_numbers = #tpu.dot_dimension_numbers<[1], [0], [0], [1], [0, 0, 1, 1], [], []>} : vector<256x64xf32>, vector<64x64xf32>, vector<256x64xf32> -> vector<256x64xf32>
    %64 = arith.addf %58, %63 : vector<256x64xf32>
    %65 = vector.extract_strided_slice %51 {offsets = [2, 0, 0], sizes = [32, 8, 64], strides = [1, 1, 1]} : vector<34x8x64xf32> to vector<32x8x64xf32>
    %66 = vector.shape_cast %65 : vector<32x8x64xf32> to vector<256x64xf32>
    %c2_27 = arith.constant 2 : index
    %c0_28 = arith.constant 0 : index
    %c0_29 = arith.constant 0 : index
    %67 = vector.load %arg4[%c2_27, %c0_28, %c0_29] : memref<3x64x64xf32, #tpu.memory_space<vmem>>, vector<1x64x64xf32>
    %68 = vector.shape_cast %67 : vector<1x64x64xf32> to vector<64x64xf32>
    %cst_30 = arith.constant dense<0.000000e+00> : vector<256x64xf32>
    %69 = tpu.matmul %66, %68, %cst_30 {dimension_numbers = #tpu.dot_dimension_numbers<[1], [0], [0], [1], [0, 0, 1, 1], [], []>} : vector<256x64xf32>, vector<64x64xf32>, vector<256x64xf32> -> vector<256x64xf32>
    %70 = arith.addf %64, %69 : vector<256x64xf32>
    %c0_31 = arith.constant 0 : index
    %c0_32 = arith.constant 0 : index
    %71 = vector.load %arg5[%c0_31, %c0_32] : memref<1x64xf32, #tpu.memory_space<vmem>>, vector<1x64xf32>
    %72 = vector.broadcast %71 : vector<1x64xf32> to vector<256x64xf32>
    %73 = arith.addf %70, %72 : vector<256x64xf32>
    %cst_33 = arith.constant 0.000000e+00 : f32
    %74 = vector.broadcast %cst_33 : f32 to vector<256x64xf32>
    %75 = arith.maximumf %73, %74 : vector<256x64xf32>
    %76 = vector.shape_cast %75 : vector<256x64xf32> to vector<16x2x8x64xf32>
    %77 = vector.extract_strided_slice %76 {offsets = [0, 0, 0, 0], sizes = [16, 1, 8, 64], strides = [1, 1, 1, 1]} : vector<16x2x8x64xf32> to vector<16x1x8x64xf32>
    %78 = vector.shape_cast %77 : vector<16x1x8x64xf32> to vector<16x8x64xf32>
    %79 = vector.extract_strided_slice %76 {offsets = [0, 1, 0, 0], sizes = [16, 1, 8, 64], strides = [1, 1, 1, 1]} : vector<16x2x8x64xf32> to vector<16x1x8x64xf32>
    %80 = vector.shape_cast %79 : vector<16x1x8x64xf32> to vector<16x8x64xf32>
    %81 = arith.maximumf %78, %80 : vector<16x8x64xf32>
    %82 = vector.extract_strided_slice %81 {offsets = [0, 0, 0], sizes = [16, 8, 32], strides = [1, 1, 1]} : vector<16x8x64xf32> to vector<16x8x32xf32>
    %83 = vector.extract_strided_slice %81 {offsets = [0, 0, 32], sizes = [16, 8, 32], strides = [1, 1, 1]} : vector<16x8x64xf32> to vector<16x8x32xf32>
    %84 = arith.maximumf %82, %83 : vector<16x8x32xf32>
    %85 = vector.shape_cast %84 : vector<16x8x32xf32> to vector<128x32xf32>
    %c0_34 = arith.constant 0 : index
    %c0_35 = arith.constant 0 : index
    %c0_36 = arith.constant 0 : index
    %86 = vector.load %arg6[%c0_34, %c0_35, %c0_36] : memref<2x128x32xf32, #tpu.memory_space<vmem>>, vector<1x128x32xf32>
    %87 = vector.shape_cast %86 : vector<1x128x32xf32> to vector<128x32xf32>
    %88 = arith.mulf %85, %87 : vector<128x32xf32>
    %89 = vector.shape_cast %88 : vector<128x32xf32> to vector<1x128x32xf32>
    %cst_37 = arith.constant dense<0.000000e+00> : vector<1xf32>
    %90 = vector.multi_reduction <add>, %89, %cst_37 [1, 2] : vector<1x128x32xf32> to vector<1xf32>
    %91 = vector.shape_cast %90 : vector<1xf32> to vector<1x1x1xf32>
    %92 = vector.extract %91[0, 0, 0] : f32 from vector<1x1x1xf32>
    %c1_38 = arith.constant 1 : index
    %c0_39 = arith.constant 0 : index
    %c0_40 = arith.constant 0 : index
    %93 = vector.load %arg6[%c1_38, %c0_39, %c0_40] : memref<2x128x32xf32, #tpu.memory_space<vmem>>, vector<1x128x32xf32>
    %94 = vector.shape_cast %93 : vector<1x128x32xf32> to vector<128x32xf32>
    %95 = arith.mulf %85, %94 : vector<128x32xf32>
    %96 = vector.shape_cast %95 : vector<128x32xf32> to vector<1x128x32xf32>
    %cst_41 = arith.constant dense<0.000000e+00> : vector<1xf32>
    %97 = vector.multi_reduction <add>, %96, %cst_41 [1, 2] : vector<1x128x32xf32> to vector<1xf32>
    %98 = vector.shape_cast %97 : vector<1xf32> to vector<1x1x1xf32>
    %99 = vector.extract %98[0, 0, 0] : f32 from vector<1x1x1xf32>
    %100 = tpu.iota {dimensions = array<i32: 1>} : vector<1x2xi32>
    %c0_i32_42 = arith.constant 0 : i32
    %101 = vector.broadcast %c0_i32_42 : i32 to vector<1x2xi32>
    %102 = arith.cmpi eq, %100, %101 : vector<1x2xi32>
    %103 = vector.broadcast %92 : f32 to vector<1x2xf32>
    %104 = vector.broadcast %99 : f32 to vector<1x2xf32>
    %105 = arith.select %102, %103, %104 : vector<1x2xi1>, vector<1x2xf32>
    %c0_43 = arith.constant 0 : index
    %c0_44 = arith.constant 0 : index
    %106 = vector.load %arg7[%c0_43, %c0_44] : memref<1x2xf32, #tpu.memory_space<vmem>>, vector<1x2xf32>
    %107 = arith.addf %105, %106 : vector<1x2xf32>
    %c0_45 = arith.constant 0 : index
    %c0_46 = arith.constant 0 : index
    %c0_47 = arith.constant 0 : index
    %108 = vector.load %arg8[%c0_45, %c0_46, %c0_47] : memref<1x1x2xf32, #tpu.memory_space<vmem>>, vector<1x1x2xf32>
    %109 = vector.shape_cast %108 : vector<1x1x2xf32> to vector<1x2xf32>
    %110 = vector.shape_cast %107 : vector<1x2xf32> to vector<1x1x2xf32>
    tpu.vector_store %arg8[%c0_45, %c0_46, %c0_47], %110 {strides = array<i32>} : memref<1x1x2xf32, #tpu.memory_space<vmem>>, vector<1x1x2xf32>,
    return
  }
  func.func @transform_0(%arg0: i32) -> (i32, i32, i32, i32) {
    %c0_i32 = arith.constant 0 : i32
    %c0_i32_0 = arith.constant 0 : i32
    %c0_i32_1 = arith.constant 0 : i32
    %c0_i32_2 = arith.constant 0 : i32
    return %arg0, %c0_i32, %c0_i32_0, %c0_i32_1 : i32, i32, i32, i32
  }
  func.func @transform_1(%arg0: i32) -> (i32, i32, i32) {
    %c0_i32 = arith.constant 0 : i32
    %c0_i32_0 = arith.constant 0 : i32
    %c0_i32_1 = arith.constant 0 : i32
    %c0_i32_2 = arith.constant 0 : i32
    return %c0_i32, %c0_i32_0, %c0_i32_1 : i32, i32, i32
  }
  func.func @transform_2(%arg0: i32) -> (i32, i32) {
    %c0_i32 = arith.constant 0 : i32
    %c0_i32_0 = arith.constant 0 : i32
    %c0_i32_1 = arith.constant 0 : i32
    return %c0_i32, %c0_i32_0 : i32, i32
  }
  func.func @transform_3(%arg0: i32) -> (i32, i32, i32) {
    %c0_i32 = arith.constant 0 : i32
    %c0_i32_0 = arith.constant 0 : i32
    %c0_i32_1 = arith.constant 0 : i32
    %c0_i32_2 = arith.constant 0 : i32
    return %c0_i32, %c0_i32_0, %c0_i32_1 : i32, i32, i32
  }
  func.func @transform_4(%arg0: i32) -> (i32, i32) {
    %c0_i32 = arith.constant 0 : i32
    %c0_i32_0 = arith.constant 0 : i32
    %c0_i32_1 = arith.constant 0 : i32
    return %c0_i32, %c0_i32_0 : i32, i32
  }
  func.func @transform_5(%arg0: i32) -> (i32, i32, i32) {
    %c0_i32 = arith.constant 0 : i32
    %c0_i32_0 = arith.constant 0 : i32
    %c0_i32_1 = arith.constant 0 : i32
    %c0_i32_2 = arith.constant 0 : i32
    return %c0_i32, %c0_i32_0, %c0_i32_1 : i32, i32, i32
  }
  func.func @transform_6(%arg0: i32) -> (i32, i32) {
    %c0_i32 = arith.constant 0 : i32
    %c0_i32_0 = arith.constant 0 : i32
    %c0_i32_1 = arith.constant 0 : i32
    return %c0_i32, %c0_i32_0 : i32, i32
  }
  func.func @transform_7(%arg0: i32) -> (i32, i32, i32) {
    %c0_i32 = arith.constant 0 : i32
    %c0_i32_0 = arith.constant 0 : i32
    %c0_i32_1 = arith.constant 0 : i32
    return %arg0, %c0_i32, %c0_i32_0 : i32, i32, i32
  }
}

</mosaic_0001>

<bundles_post_ra>
// kernel: simple_cnn_forward.1
= control target key start
LH: loop header
LB: loop body
LE: loop exit
PB: predicated region body
PF: predicated region fallthrough
CT: control target
= control target key end

     0   :  { %12 = vsyncpa [#allocation3], 0  ;;  %s6680_s0 = inlined_call_operand.vmem [shape: f32[2,66,8,10], index: 0, kind: input, shape index: {}]   ;;  %s6681_s1 = inlined_call_operand.vmem [shape: f32[3,10,128], index: 1, kind: input, shape index: {}]   ;;  %s6682_s2 = inlined_call_operand.vmem [shape: f32[1,128], index: 2, kind: input, shape index: {}]   ;;  %s6683_s3 = inlined_call_operand.vmem [shape: f32[3,64,64], index: 3, kind: input, shape index: {}]   ;;  %s6684_s4 = inlined_call_operand.vmem [shape: f32[1,64], index: 4, kind: input, shape index: {}]   ;;  %s6685_s5 = inlined_call_operand.vmem [shape: f32[2,128,32], index: 5, kind: input, shape index: {}]   ;;  %s6686_s6 = inlined_call_operand.vmem [shape: f32[1,2], index: 6, kind: input, shape index: {}]   ;;  %s6687_s7 = inlined_call_operand.hbm [shape: f32[2,1,2], index: 7, kind: output, shape index: {}]  }
   0x1   :  { %14 = vsyncpa [#allocation3 + $0x1], 0  ;;  %s4932_s24 = smov 0   ;;  %s4934_s25 = smov 0  }
   0x2   :  { %s4936_s26 = smov 0   ;;  %s4938_s27 = smov 0  }
   0x3 LB: > { %s4953_s28 = sadd.s32 4294967295, %s4885_s27   ;;  %s3370_s29 = sadd.s32 4294967294, %s4885_s27   ;;  %s4885_s27 = sphi %s4938_s27, %s6717_s27   ;;  %s4881_s26 = sphi %s4936_s26, %s6716_s26   ;;  %s4877_s25 = sphi %s4934_s25, %s6715_s25   ;;  %s4873_s24 = sphi %s4932_s24, %s6714_s24  }
   0x4   : > { %s4957_s30 = sadd.s32 1, %s4885_s27   ;;  %s179_s8 = sadd.s32 1, %s4881_s26 }
   0x5   : > { %s176_s9 = ssub.s32 %s4885_s27, %s4957_s30  ;;  %p189_p0 = scmp.ne.s32.totalorder %s4881_s26, %s4877_s25 }
   0x6   : > { %p177_p1 = scmp.eq.s32.totalorder %s176_s9, 0  ;;  %p190_p2 = scmp.eq.s32.totalorder %s4953_s28, 1 }
   0x7   : > { %p195_p3 = scmp.ne.s32.totalorder %s4877_s25, %s4873_s24  ;;  %p196_p4 = scmp.eq.s32.totalorder %s3370_s29, 1 }
   0x8   : > { %s4968_s10 = scalar_select %p177_p1, %s4881_s26, %s179_s8  }
   0x9   : > { %p4970_p5 = por %p190_p2, %p189_p0  ;;  %p4974_p6 = por %p196_p4, %p195_p3 }
   0xa   : > { %p3373_p7 = scmp.ge.s32.totalorder %s4885_s27, 1  ;;  %p240_p8 = scmp.lt.s32.totalorder %s4885_s27, 3 }
   0xc   : > { %p241_p9 = pnand %p3373_p7, %p240_p8 }
   0xe   : > { %244 = sbr.rel (%p241_p9) target bundleno = 1346 (0x542), region = 48 }
  0x15   : > { %v3375_v0 = vld [vmem:[%s6681_s1 + $0x10] sm:$0xff]  ;;  %v3376_v1 = vld [vmem:[%s6681_s1 + $0x18] sm:$0x3]  ;;  %vm540_vm0 = vcmask 1041408   ;;  %p271_p10 = scmp.lt.s32.totalorder %s4953_s28, 1  ;;  %vm4887_vm1 = vmmov 1  }
  0x16   : > { %v4515_v2 = vpack.c.bf16 %v3376_v1, %v3375_v0  ;;  %vm4987_vm2 = vmpackc.low %vm540_vm0, %vm4887_vm1  ;;  %v342_v4 = vld [vmem:[%s6681_s1] sm:$0xff]  ;;  %v343_v5 = vld [vmem:[%s6681_s1 + $0x8] sm:$0x3]  ;;  %vm347_vm3 = vcmask 80896   ;;  %s4888_s20 = smov 64   ;;  %vm2165_vm11 = vcmask 523264  }
  0x17   : > { %s272_s21 = scalar_select %p271_p10, %s4953_s28, 1  ;;  %v4521_v6 = vpack.c.bf16 %v343_v5, %v342_v4  ;;  %v3507_v7 = vld [vmem:[%s6681_s1 + $0x20] sm:$0xff]  ;;  %v3508_v8 = vld [vmem:[%s6681_s1 + $0x28] sm:$0x3]  ;;  %vm3180_vm12 = vcmask 261120   ;;  %vm3300_vm14 = vcmask 8192  }
  0x18   : > { %4517 = vmatprep.subr.msk.bf16.mxu0 %vm4987_vm2, %v4515_v2  ;;  %4581 = vmatprep.subr.msk.bf16.mxu1 %vm4987_vm2, %v4515_v2  ;;  %v5028_v12 = vpack.c.bf16 %v3508_v8, %v3507_v7  ;;  %s269_s23 = sand.u32 1, %s4877_s25   ;;  %s3702_s8 = sshll.u32 %s4953_s28, 4 }
  0x19   : > { %4520 = vmatpush3.bf16.msk.msra.mxu0 %vm4987_vm2, %v4515_v2  ;;  %s4775_s22 = smul.u32 528, %s272_s21  ;;  %4582 = vmatpush3.bf16.msk.msra.mxu1 %vm4987_vm2, %v4515_v2  ;;  %s270_s14 = scalar_lea.vmem [#allocation2], %s269_s23 }
  0x1a   : > { %4523 = vmatprep.subr.msk.bf16.mxu0 %vm4987_vm2, %v4521_v6  ;;  %s6638_s18 = scalar_lea.hbm %s6687_s7, %s3702_s8  ;;  %s3303_s28 = scalar_lea.sflag [#allocation3], %s269_s23 }
  0x1b   : > { %s5017_s15 = scalar_lea.vmem %s6680_s0, %s4775_s22  ;;  %s4891_s21 = smov [#allocation2]  }
  0x1c   : > { %v5020_v9 = vld [vmem:[%s5017_s15 + $0x8] sm:$0xff]  ;;  %v5023_v10 = vld [vmem:[%s5017_s15 + $0x10] sm:$0xff]  ;;  %v5026_v11 = vld [vmem:[%s5017_s15 + $0x18] sm:$0xff]  ;;  %s4827_s22 = sshll.u32 %s4891_s21, 4  ;;  %s4828_s22 = int_to_ptr.vmem [resolvable:$false] %s4827_s22 }
  0x1d   : > { %4027 = vmatprep.mubr.msk.f32.mxu0 %vm347_vm3, %v5020_v9  ;;  %v5039_v13 = vld [vmem:[%s5017_s15 + $0x20] sm:$0xff]  ;;  %v5042_v14 = vld [vmem:[%s5017_s15 + $0x28] sm:$0xff]  ;;  %v5053_v16 = vld [vmem:[%s5017_s15 + $0x90] sm:$0xff] }
  0x1e   : > { %4028 = vmatmul.mubr.msk.f32.vlgmr.msra.gmra.mrb[0].mxu0 %vm347_vm3, %v5023_v10  ;;  %v5048_v15 = vld [vmem:[%s5017_s15 + $0x88] sm:$0xff]  ;;  %v5060_v17 = vld [vmem:[%s5017_s15 + $0x30] sm:$0xff]  ;;  %v5063_v18 = vld [vmem:[%s5017_s15 + $0x98] sm:$0xff] }
  0x1f   : > { %4526 = vmatpush3.bf16.msk.msra.mxu0 %vm4987_vm2, %v4521_v6  ;;  %4030 = vmatprep.mubr.msk.f32.mxu0 %vm347_vm3, %v5026_v11  ;;  %v5068_v19 = vld [vmem:[%s5017_s15 + $0x38] sm:$0xff]  ;;  %v5075_v20 = vld [vmem:[%s5017_s15 + $0xa0] sm:$0xff]  ;;  %v5083_v22 = vld [vmem:[%s5017_s15 + $0xa8] sm:$0xff] }
  0x20   : > { %4529 = vmatprep.subr.msk.bf16.mxu0 %vm4987_vm2, %v5028_v12  ;;  %4051 = vmatprep.mubr.msk.f32.mxu1 %vm347_vm3, %v5048_v15  ;;  %v5080_v21 = vld [vmem:[%s5017_s15 + $0x40] sm:$0xff]  ;;  %v5088_v23 = vld [vmem:[%s5017_s15 + $0x48] sm:$0xff]  ;;  %v5095_v24 = vld [vmem:[%s5017_s15 + $0xb0] sm:$0xff] }
  0x21   : > { %4052 = vmatmul.mubr.msk.f32.vlgmr.msra.gmra.mrb[0].mxu1 %vm347_vm3, %v5053_v16  ;;  %v5100_v25 = vld [vmem:[%s5017_s15 + $0x50] sm:$0xff]  ;;  %v5103_v26 = vld [vmem:[%s5017_s15 + $0xb8] sm:$0xff]  ;;  %v5115_v28 = vld [vmem:[%s5017_s15 + $0xc0] sm:$0xff] }
  0x22   : > { %4031 = vmatmul.mubr.msk.f32.gmra.mrb[2].mxu0 %vm347_vm3, %v5039_v13  ;;  %4054 = vmatprep.mubr.msk.f32.mxu1 %vm347_vm3, %v5063_v18  ;;  %v5108_v27 = vld [vmem:[%s5017_s15 + $0x58] sm:$0xff]  ;;  %v5120_v29 = vld [vmem:[%s5017_s15 + $0x60] sm:$0xff]  ;;  %v5123_v30 = vld [vmem:[%s5017_s15 + $0xc8] sm:$0xff] }
  0x23   : > { %4033 = vmatprep.mubr.msk.f32.mxu0 %vm347_vm3, %v5042_v14  ;;  %v5128_v31 = vld [vmem:[%s5017_s15 + $0x68] sm:$0xff]  ;;  %v5135_v32 = vld [vmem:[%s5017_s15 + $0xd0] sm:$0xff]  ;;  %v5143_v34 = vld [vmem:[%s5017_s15 + $0xd8] sm:$0xff] }
  0x24   : > { %v5140_v33 = vld [vmem:[%s5017_s15 + $0x70] sm:$0xff]  ;;  %v5148_v35 = vld [vmem:[%s5017_s15 + $0x78] sm:$0xff]  ;;  %v5155_v36 = vld [vmem:[%s5017_s15 + $0xe0] sm:$0xff] }
  0x25   : > { %4055 = vmatmul.mubr.msk.f32.gmra.mrb[2].mxu1 %vm347_vm3, %v5075_v20  ;;  %v5160_v37 = vld [vmem:[%s5017_s15 + $0x80] sm:$0xff]  ;;  %v5163_v38 = vld [vmem:[%s5017_s15 + $0xe8] sm:$0xff]  ;;  %v5173_v40 = vld [vmem:[%s5017_s15 + $0xf0] sm:$0xff] }
  0x26   : > { %4034 = vmatmul.mubr.msk.f32.gmra.mrb[4].mxu0 %vm347_vm3, %v5060_v17  ;;  %4057 = vmatprep.mubr.msk.f32.mxu1 %vm347_vm3, %v5083_v22  ;;  %v276_v39 = vld [vmem:[%s5017_s15] sm:$0xff]  ;;  %v5177_v41 = vld [vmem:[%s5017_s15 + $0xf8] sm:$0xff]  ;;  %v5194_v43 = vld [vmem:[%s5017_s15 + $0x108] sm:$0xff] }
  0x27   : > { %4036 = vmatprep.mubr.msk.f32.mxu0 %vm347_vm3, %v5068_v19  ;;  %v5191_v42 = vld [vmem:[%s5017_s15 + $0x100] sm:$0xff]  ;;  %v5205_v44 = vld [vmem:[%s5017_s15 + $0x110] sm:$0xff]  ;;  %v5208_v45 = vld [vmem:[%s5017_s15 + $0x118] sm:$0xff] }
  0x28   : > { %v5219_v46 = vld [vmem:[%s5017_s15 + $0x120] sm:$0xff]  ;;  %v5222_v47 = vld [vmem:[%s5017_s15 + $0x128] sm:$0xff]  ;;  %v5233_v48 = vld [vmem:[%s5017_s15 + $0x130] sm:$0xff] }
  0x29   : > { %4058 = vmatmul.mubr.msk.f32.gmra.mrb[4].mxu1 %vm347_vm3, %v5095_v24  ;;  %v5236_v49 = vld [vmem:[%s5017_s15 + $0x138] sm:$0xff]  ;;  %v5247_v50 = vld [vmem:[%s5017_s15 + $0x140] sm:$0xff]  ;;  %v5250_v51 = vld [vmem:[%s5017_s15 + $0x148] sm:$0xff] }
  0x2a   : > { %4037 = vmatmul.mubr.msk.f32.gmra.mrb[6].mxu0 %vm347_vm3, %v5080_v21  ;;  %4060 = vmatprep.mubr.msk.f32.mxu1 %vm347_vm3, %v5103_v26  ;;  %v5261_v52 = vld [vmem:[%s5017_s15 + $0x150] sm:$0xff]  ;;  %v5264_v53 = vld [vmem:[%s5017_s15 + $0x158] sm:$0xff]  ;;  %v5275_v54 = vld [vmem:[%s5017_s15 + $0x160] sm:$0xff] }
  0x2b   : > { %4039 = vmatprep.mubr.msk.f32.mxu0 %vm347_vm3, %v5088_v23  ;;  %v5278_v55 = vld [vmem:[%s5017_s15 + $0x168] sm:$0xff]  ;;  %v5289_v56 = vld [vmem:[%s5017_s15 + $0x170] sm:$0xff]  ;;  %v5292_v57 = vld [vmem:[%s5017_s15 + $0x178] sm:$0xff] }
  0x2c   : > { %v5303_v58 = vld [vmem:[%s5017_s15 + $0x180] sm:$0xff]  ;;  %v5306_v59 = vld [vmem:[%s5017_s15 + $0x188] sm:$0xff]  ;;  %v5317_v60 = vld [vmem:[%s5017_s15 + $0x190] sm:$0xff] }
  0x2d   : > { %4061 = vmatmul.mubr.msk.f32.gmra.mrb[6].mxu1 %vm347_vm3, %v5115_v28  ;;  %v5320_v61 = vld [vmem:[%s5017_s15 + $0x198] sm:$0xff]  ;;  %v5331_v62 = vld [vmem:[%s5017_s15 + $0x1a0] sm:$0xff]  ;;  %v5334_v63 = vld [vmem:[%s5017_s15 + $0x1a8] sm:$0xff] }
  0x2e   : > { %4040 = vmatmul.mubr.msk.f32.gmra.mrb[8].mxu0 %vm347_vm3, %v5100_v25  ;;  %4063 = vmatprep.mubr.msk.f32.mxu1 %vm347_vm3, %v5123_v30  ;;  %v5345_v0 = vld [vmem:[%s5017_s15 + $0x1b0] sm:$0xff]  ;;  %v5348_v1 = vld [vmem:[%s5017_s15 + $0x1b8] sm:$0xff]  ;;  %v5359_v2 = vld [vmem:[%s5017_s15 + $0x1c0] sm:$0xff] }
  0x2f   : > { %4042 = vmatprep.mubr.msk.f32.mxu0 %vm347_vm3, %v5108_v27  ;;  %v5362_v3 = vld [vmem:[%s5017_s15 + $0x1c8] sm:$0xff]  ;;  %v5373_v4 = vld [vmem:[%s5017_s15 + $0x1d0] sm:$0xff]  ;;  %v5376_v5 = vld [vmem:[%s5017_s15 + $0x1d8] sm:$0xff] }
  0x30   : > { %v5387_v6 = vld [vmem:[%s5017_s15 + $0x1e0] sm:$0xff]  ;;  %v5390_v7 = vld [vmem:[%s5017_s15 + $0x1e8] sm:$0xff]  ;;  %v5401_v8 = vld [vmem:[%s5017_s15 + $0x1f0] sm:$0xff] }
  0x31   : > { %4064 = vmatmul.mubr.msk.f32.gmra.mrb[8].mxu1 %vm347_vm3, %v5135_v32 }
  0x32   : > { %4043 = vmatmul.mubr.msk.f32.gmra.mrb[10].mxu0 %vm347_vm3, %v5120_v29  ;;  %4066 = vmatprep.mubr.msk.f32.mxu1 %vm347_vm3, %v5143_v34 }
  0x33   : > { %4045 = vmatprep.mubr.msk.f32.mxu0 %vm347_vm3, %v5128_v31 }
  0x35   : > { %4067 = vmatmul.mubr.msk.f32.gmra.mrb[10].mxu1 %vm347_vm3, %v5155_v36 }
  0x36   : > { %4046 = vmatmul.mubr.msk.f32.gmra.mrb[12].mxu0 %vm347_vm3, %v5140_v33  ;;  %4069 = vmatprep.mubr.msk.f32.mxu1 %vm347_vm3, %v5163_v38 }
  0x37   : > { %4048 = vmatprep.mubr.msk.f32.mxu0 %vm347_vm3, %v5148_v35 }
  0x39   : > { %4070 = vmatmul.mubr.msk.f32.gmra.mrb[12].mxu1 %vm347_vm3, %v5173_v40 }
  0x3a   : > { %4049 = vmatmul.mubr.msk.f32.gmra.mrb[14].mxu0 %vm347_vm3, %v5160_v37  ;;  %4072 = vmatprep.mubr.msk.f32.mxu1 %vm347_vm3, %v5177_v41 }
  0x3b   : > { %4127 = vmatprep.mubr.msk.f32.mxu0 %vm347_vm3, %v276_v39 }
  0x3d   : > { %4073 = vmatmul.mubr.msk.f32.gmra.mrb[14].mxu1 %vm347_vm3, %v5191_v42 }
  0x3e   : > { %4128 = vmatmul.mubr.msk.f32.vlgmr.msra.gmra.mrb[0].mxu0 %vm347_vm3, %v5020_v9  ;;  %4075 = vmatprep.mubr.msk.f32.mxu1 %vm347_vm3, %v5194_v43  ;;  %v5404_v9 = vld [vmem:[%s5017_s15 + $0x1f8] sm:$0xff] }
  0x3f   : > { %4532 = vmatpush3.bf16.msk.msra.mxu0 %vm4987_vm2, %v5028_v12  ;;  %4130 = vmatprep.mubr.msk.f32.mxu0 %vm347_vm3, %v5023_v10  ;;  %v5469_v12 = vld [vmem:[%s5017_s15 + $0x200] sm:$0xff] }
  0x41   : > { %4076 = vmatmul.mubr.msk.f32.gmra.mrb[16].mxu1 %vm347_vm3, %v5205_v44 }
  0x42   : > { %4131 = vmatmul.mubr.msk.f32.gmra.mrb[2].mxu0 %vm347_vm3, %v5026_v11  ;;  %4078 = vmatprep.mubr.msk.f32.mxu1 %vm347_vm3, %v5208_v45 }
  0x43   : > { %4133 = vmatprep.mubr.msk.f32.mxu0 %vm347_vm3, %v5039_v13 }
  0x45   : > { %4079 = vmatmul.mubr.msk.f32.gmra.mrb[18].mxu1 %vm347_vm3, %v5219_v46 }
  0x46   : > { %4134 = vmatmul.mubr.msk.f32.gmra.mrb[4].mxu0 %vm347_vm3, %v5042_v14  ;;  %4081 = vmatprep.mubr.msk.f32.mxu1 %vm347_vm3, %v5222_v47 }
  0x47   : > { %4136 = vmatprep.mubr.msk.f32.mxu0 %vm347_vm3, %v5060_v17 }
  0x49   : > { %4082 = vmatmul.mubr.msk.f32.gmra.mrb[20].mxu1 %vm347_vm3, %v5233_v48 }
  0x4a   : > { %4137 = vmatmul.mubr.msk.f32.gmra.mrb[6].mxu0 %vm347_vm3, %v5068_v19  ;;  %4084 = vmatprep.mubr.msk.f32.mxu1 %vm347_vm3, %v5236_v49 }
  0x4b   : > { %4139 = vmatprep.mubr.msk.f32.mxu0 %vm347_vm3, %v5080_v21 }
  0x4d   : > { %4085 = vmatmul.mubr.msk.f32.gmra.mrb[22].mxu1 %vm347_vm3, %v5247_v50 }
  0x4e   : > { %4140 = vmatmul.mubr.msk.f32.gmra.mrb[8].mxu0 %vm347_vm3, %v5088_v23  ;;  %4087 = vmatprep.mubr.msk.f32.mxu1 %vm347_vm3, %v5250_v51 }
  0x4f   : > { %4142 = vmatprep.mubr.msk.f32.mxu0 %vm347_vm3, %v5100_v25 }
  0x51   : > { %4088 = vmatmul.mubr.msk.f32.gmra.mrb[24].mxu1 %vm347_vm3, %v5261_v52 }
  0x52   : > { %4143 = vmatmul.mubr.msk.f32.gmra.mrb[10].mxu0 %vm347_vm3, %v5108_v27  ;;  %4090 = vmatprep.mubr.msk.f32.mxu1 %vm347_vm3, %v5264_v53 }
  0x53   : > { %4145 = vmatprep.mubr.msk.f32.mxu0 %vm347_vm3, %v5120_v29 }
  0x55   : > { %4091 = vmatmul.mubr.msk.f32.gmra.mrb[26].mxu1 %vm347_vm3, %v5275_v54 }
  0x56   : > { %4146 = vmatmul.mubr.msk.f32.gmra.mrb[12].mxu0 %vm347_vm3, %v5128_v31  ;;  %4093 = vmatprep.mubr.msk.f32.mxu1 %vm347_vm3, %v5278_v55 }
  0x57   : > { %4148 = vmatprep.mubr.msk.f32.mxu0 %vm347_vm3, %v5140_v33 }
  0x59   : > { %4094 = vmatmul.mubr.msk.f32.gmra.mrb[28].mxu1 %vm347_vm3, %v5289_v56 }
  0x5a   : > { %4149 = vmatmul.mubr.msk.f32.gmra.mrb[14].mxu0 %vm347_vm3, %v5148_v35  ;;  %4096 = vmatprep.mubr.msk.f32.mxu1 %vm347_vm3, %v5292_v57 }
  0x5b   : > { %4151 = vmatprep.mubr.msk.f32.mxu0 %vm347_vm3, %v5160_v37 }
  0x5d   : > { %4097 = vmatmul.mubr.msk.f32.gmra.mrb[30].mxu1 %vm347_vm3, %v5303_v58 }
  0x5e   : > { %4152 = vmatmul.mubr.msk.f32.gmra.mrb[16].mxu0 %vm347_vm3, %v5048_v15  ;;  %4099 = vmatprep.mubr.msk.f32.mxu1 %vm347_vm3, %v5306_v59 }
  0x5f   : > { %4154 = vmatprep.mubr.msk.f32.mxu0 %vm347_vm3, %v5053_v16 }
  0x61   : > { %4100 = vmatmul.mubr.msk.f32.gmra.mrb[32].mxu1 %vm347_vm3, %v5317_v60 }
  0x62   : > { %4155 = vmatmul.mubr.msk.f32.gmra.mrb[18].mxu0 %vm347_vm3, %v5063_v18  ;;  %4102 = vmatprep.mubr.msk.f32.mxu1 %vm347_vm3, %v5320_v61 }
  0x63   : > { %4157 = vmatprep.mubr.msk.f32.mxu0 %vm347_vm3, %v5075_v20 }
  0x65   : > { %4103 = vmatmul.mubr.msk.f32.gmra.mrb[34].mxu1 %vm347_vm3, %v5331_v62 }
  0x66   : > { %4158 = vmatmul.mubr.msk.f32.gmra.mrb[20].mxu0 %vm347_vm3, %v5083_v22  ;;  %4105 = vmatprep.mubr.msk.f32.mxu1 %vm347_vm3, %v5334_v63 }
  0x67   : > { %4160 = vmatprep.mubr.msk.f32.mxu0 %vm347_vm3, %v5095_v24 }
  0x69   : > { %4106 = vmatmul.mubr.msk.f32.gmra.mrb[36].mxu1 %vm347_vm3, %v5345_v0 }
  0x6a   : > { %4161 = vmatmul.mubr.msk.f32.gmra.mrb[22].mxu0 %vm347_vm3, %v5103_v26  ;;  %4108 = vmatprep.mubr.msk.f32.mxu1 %vm347_vm3, %v5348_v1 }
  0x6b   : > { %4163 = vmatprep.mubr.msk.f32.mxu0 %vm347_vm3, %v5115_v28 }
  0x6d   : > { %4109 = vmatmul.mubr.msk.f32.gmra.mrb[38].mxu1 %vm347_vm3, %v5359_v2 }
  0x6e   : > { %4164 = vmatmul.mubr.msk.f32.gmra.mrb[24].mxu0 %vm347_vm3, %v5123_v30  ;;  %4111 = vmatprep.mubr.msk.f32.mxu1 %vm347_vm3, %v5362_v3 }
  0x6f   : > { %4166 = vmatprep.mubr.msk.f32.mxu0 %vm347_vm3, %v5135_v32 }
  0x71   : > { %4112 = vmatmul.mubr.msk.f32.gmra.mrb[40].mxu1 %vm347_vm3, %v5373_v4 }
  0x72   : > { %4167 = vmatmul.mubr.msk.f32.gmra.mrb[26].mxu0 %vm347_vm3, %v5143_v34  ;;  %4114 = vmatprep.mubr.msk.f32.mxu1 %vm347_vm3, %v5376_v5 }
  0x73   : > { %4169 = vmatprep.mubr.msk.f32.mxu0 %vm347_vm3, %v5155_v36 }
  0x75   : > { %4115 = vmatmul.mubr.msk.f32.gmra.mrb[42].mxu1 %vm347_vm3, %v5387_v6 }
  0x76   : > { %4170 = vmatmul.mubr.msk.f32.gmra.mrb[28].mxu0 %vm347_vm3, %v5163_v38  ;;  %4117 = vmatprep.mubr.msk.f32.mxu1 %vm347_vm3, %v5390_v7 }
  0x77   : > { %4172 = vmatprep.mubr.msk.f32.mxu0 %vm347_vm3, %v5173_v40 }
  0x79   : > { %4118 = vmatmul.mubr.msk.f32.gmra.mrb[44].mxu1 %vm347_vm3, %v5401_v8 }
  0x7a   : > { %4173 = vmatmul.mubr.msk.f32.gmra.mrb[30].mxu0 %vm347_vm3, %v5177_v41  ;;  %4120 = vmatprep.mubr.msk.f32.mxu1 %vm347_vm3, %v5404_v9 }
  0x7b   : > { %4175 = vmatprep.mubr.msk.f32.mxu0 %vm347_vm3, %v5191_v42 }
  0x7d   : > { %4121 = vmatmul.mubr.msk.f32.gmra.mrb[46].mxu1 %vm347_vm3, %v5469_v12 }
  0x7e   : > { %4176 = vmatmul.mubr.msk.f32.gmra.mrb[32].mxu0 %vm347_vm3, %v5194_v43 }
  0x7f   : > { %4178 = vmatprep.mubr.msk.f32.mxu0 %vm347_vm3, %v5205_v44 }
  0x82   : > { %4179 = vmatmul.mubr.msk.f32.gmra.mrb[34].mxu0 %vm347_vm3, %v5208_v45 }
  0x83   : > { %4181 = vmatprep.mubr.msk.f32.mxu0 %vm347_vm3, %v5219_v46 }
  0x86   : > { %4182 = vmatmul.mubr.msk.f32.gmra.mrb[36].mxu0 %vm347_vm3, %v5222_v47 }
  0x87   : > { %4184 = vmatprep.mubr.msk.f32.mxu0 %vm347_vm3, %v5233_v48 }
  0x8a   : > { %4185 = vmatmul.mubr.msk.f32.gmra.mrb[38].mxu0 %vm347_vm3, %v5236_v49 }
  0x8b   : > { %4187 = vmatprep.mubr.msk.f32.mxu0 %vm347_vm3, %v5247_v50 }
  0x8e   : > { %4188 = vmatmul.mubr.msk.f32.gmra.mrb[40].mxu0 %vm347_vm3, %v5250_v51 }
  0x8f   : > { %4190 = vmatprep.mubr.msk.f32.mxu0 %vm347_vm3, %v5261_v52 }
  0x92   : > { %4191 = vmatmul.mubr.msk.f32.gmra.mrb[42].mxu0 %vm347_vm3, %v5264_v53 }
  0x93   : > { %4193 = vmatprep.mubr.msk.f32.mxu0 %vm347_vm3, %v5275_v54 }
  0x96   : > { %4194 = vmatmul.mubr.msk.f32.gmra.mrb[44].mxu0 %vm347_vm3, %v5278_v55 }
  0x97   : > { %4196 = vmatprep.mubr.msk.f32.mxu0 %vm347_vm3, %v5289_v56 }
  0x9a   : > { %4197 = vmatmul.mubr.msk.f32.gmra.mrb[46].mxu0 %vm347_vm3, %v5292_v57 }
  0x9b   : > { %4199 = vmatprep.mubr.msk.f32.mxu0 %vm347_vm3, %v5303_v58 }
  0x9e   : > { %4200 = vmatmul.mubr.msk.f32.gmra.mrb[48].mxu0 %vm347_vm3, %v5306_v59 }
  0x9f   : > { %4202 = vmatprep.mubr.msk.f32.mxu0 %vm347_vm3, %v5317_v60 }
  0xa2   : > { %4203 = vmatmul.mubr.msk.f32.gmra.mrb[50].mxu0 %vm347_vm3, %v5320_v61 }
  0xa3   : > { %4205 = vmatprep.mubr.msk.f32.mxu0 %vm347_vm3, %v5331_v62 }
  0xa6   : > { %4206 = vmatmul.mubr.msk.f32.gmra.mrb[52].mxu0 %vm347_vm3, %v5334_v63 }
  0xa7   : > { %4208 = vmatprep.mubr.msk.f32.mxu0 %vm347_vm3, %v5345_v0 }
  0xaa   : > { %4209 = vmatmul.mubr.msk.f32.gmra.mrb[54].mxu0 %vm347_vm3, %v5348_v1 }
  0xab   : > { %4211 = vmatprep.mubr.msk.f32.mxu0 %vm347_vm3, %v5359_v2 }
  0xae   : > { %4212 = vmatmul.mubr.msk.f32.gmra.mrb[56].mxu0 %vm347_vm3, %v5362_v3 }
  0xaf   : > { %4214 = vmatprep.mubr.msk.f32.mxu0 %vm347_vm3, %v5373_v4 }
  0xb2   : > { %4215 = vmatmul.mubr.msk.f32.gmra.mrb[58].mxu0 %vm347_vm3, %v5376_v5 }
  0xb3   : > { %4217 = vmatprep.mubr.msk.f32.mxu0 %vm347_vm3, %v5387_v6 }
  0xb6   : > { %4218 = vmatmul.mubr.msk.f32.gmra.mrb[60].mxu0 %vm347_vm3, %v5390_v7 }
  0xb7   : > { %4220 = vmatprep.mubr.msk.f32.mxu0 %vm347_vm3, %v5401_v8 }
  0xba   : > { %4221 = vmatmul.mubr.msk.f32.gmra.mrb[62].mxu0 %vm347_vm3, %v5404_v9 }
  0xbb   : > { %4227 = vmatprep.mubr.msk.f32.mxu0 %vm347_vm3, %v5023_v10 }
  0xbe   : > { %4228 = vmatmul.mubr.msk.f32.vlgmr.msra.gmra.mrb[0].mxu0 %vm347_vm3, %v5026_v11 }
  0xbf   : > { %4230 = vmatprep.mubr.msk.f32.mxu0 %vm347_vm3, %v5039_v13 }
  0xc2   : > { %4231 = vmatmul.mubr.msk.f32.gmra.mrb[2].mxu0 %vm347_vm3, %v5042_v14 }
  0xc3   : > { %4233 = vmatprep.mubr.msk.f32.mxu0 %vm347_vm3, %v5060_v17 }
  0xc6   : > { %4234 = vmatmul.mubr.msk.f32.gmra.mrb[4].mxu0 %vm347_vm3, %v5068_v19 }
  0xc7   : > { %4236 = vmatprep.mubr.msk.f32.mxu0 %vm347_vm3, %v5080_v21 }
  0xca   : > { %4237 = vmatmul.mubr.msk.f32.gmra.mrb[6].mxu0 %vm347_vm3, %v5088_v23 }
  0xcb   : > { %4239 = vmatprep.mubr.msk.f32.mxu0 %vm347_vm3, %v5100_v25 }
  0xce   : > { %4240 = vmatmul.mubr.msk.f32.gmra.mrb[8].mxu0 %vm347_vm3, %v5108_v27 }
  0xcf   : > { %4242 = vmatprep.mubr.msk.f32.mxu0 %vm347_vm3, %v5120_v29 }
  0xd2   : > { %4243 = vmatmul.mubr.msk.f32.gmra.mrb[10].mxu0 %vm347_vm3, %v5128_v31 }
  0xd3   : > { %4245 = vmatprep.mubr.msk.f32.mxu0 %vm347_vm3, %v5140_v33 }
  0xd6   : > { %4246 = vmatmul.mubr.msk.f32.gmra.mrb[12].mxu0 %vm347_vm3, %v5148_v35 }
  0xd7   : > { %4248 = vmatprep.mubr.msk.f32.mxu0 %vm347_vm3, %v5160_v37 }
  0xda   : > { %4249 = vmatmul.mubr.msk.f32.gmra.mrb[14].mxu0 %vm347_vm3, %v5048_v15  ;;  %v341_v15 = vld [vmem:[%s5017_s15 + $0x208] sm:$0xff]  ;;  %s3315_s15 = sshll.u32 %s270_s14, 4  ;;  %s6640_s15 = int_to_ptr.vmem [resolvable:$true] %s3315_s15 }
  0xdb   : > { %4251 = vmatprep.mubr.msk.f32.mxu0 %vm347_vm3, %v5053_v16  ;;  %s4823_s19 = scalar_lea.vmem %s6640_s15, 16  ;;  %p4830_p0 = scmp.lt.s32.totalorder %s6640_s15, %s4828_s22 }
  0xdc   : > { %p4824_p11 = scmp.ne.s32.totalorder %s6640_s15, %s4823_s19 }
  0xde   : > { %4252 = vmatmul.mubr.msk.f32.gmra.mrb[16].mxu0 %vm347_vm3, %v5063_v18  ;;  %p4825_p12 = pnand %p4824_p11, %p4970_p5 }
  0xdf   : > { %4254 = vmatprep.mubr.msk.f32.mxu0 %vm347_vm3, %v5075_v20 }
  0xe0   : > { %p4826_p13 = pneg %p4825_p12 }
  0xe2   : > { %4255 = vmatmul.mubr.msk.f32.gmra.mrb[18].mxu0 %vm347_vm3, %v5083_v22 }
  0xe3   : > { %4257 = vmatprep.mubr.msk.f32.mxu0 %vm347_vm3, %v5095_v24 }
  0xe6   : > { %4258 = vmatmul.mubr.msk.f32.gmra.mrb[20].mxu0 %vm347_vm3, %v5103_v26 }
  0xe7   : > { %4260 = vmatprep.mubr.msk.f32.mxu0 %vm347_vm3, %v5115_v28 }
  0xea   : > { %4261 = vmatmul.mubr.msk.f32.gmra.mrb[22].mxu0 %vm347_vm3, %v5123_v30 }
  0xeb   : > { %4263 = vmatprep.mubr.msk.f32.mxu0 %vm347_vm3, %v5135_v32 }
  0xee   : > { %4264 = vmatmul.mubr.msk.f32.gmra.mrb[24].mxu0 %vm347_vm3, %v5143_v34 }
  0xef   : > { %4266 = vmatprep.mubr.msk.f32.mxu0 %vm347_vm3, %v5155_v36 }
  0xf2   : > { %4267 = vmatmul.mubr.msk.f32.gmra.mrb[26].mxu0 %vm347_vm3, %v5163_v38 }
  0xf3   : > { %4269 = vmatprep.mubr.msk.f32.mxu0 %vm347_vm3, %v5173_v40 }
  0xf4   : > { %v5595_v10 = vpop.f32.mrb[0].mxu1 }
  0xf5   : > { %v5597_v11 = vpop.f32.mrb[1].mxu1 }
  0xf6   : > { %4270 = vmatmul.mubr.msk.f32.gmra.mrb[28].mxu0 %vm347_vm3, %v5177_v41 }
  0xf7   : > { %4272 = vmatprep.mubr.msk.f32.mxu0 %vm347_vm3, %v5191_v42 }
  0xf8   : > { %v5603_v13 = vpop.f32.mrb[2].mxu1 }
  0xf9   : > { %v5605_v14 = vpop.f32.mrb[3].mxu1 }
  0xfa   : > { %4273 = vmatmul.mubr.msk.f32.gmra.mrb[30].mxu0 %vm347_vm3, %v5194_v43 }
  0xfb   : > { %4275 = vmatprep.mubr.msk.f32.mxu0 %vm347_vm3, %v5205_v44 }
  0xfc   : > { %v5612_v16 = vpop.f32.mrb[4].mxu1 }
  0xfd   : > { %v5614_v17 = vpop.f32.mrb[5].mxu1 }
  0xfe   : > { %4276 = vmatmul.mubr.msk.f32.gmra.mrb[32].mxu0 %vm347_vm3, %v5208_v45 }
  0xff   : > { %4278 = vmatprep.mubr.msk.f32.mxu0 %vm347_vm3, %v5219_v46  ;;  %v3575_v46 = vld [vmem:[%s6683_s3 + $0x40] sm:$0xff] }
 0x100   : > { %v5617_v18 = vpop.f32.mrb[6].mxu1 }
 0x101   : > { %v5619_v19 = vpop.f32.mrb[7].mxu1 }
 0x102   : > { %4279 = vmatmul.mubr.msk.f32.gmra.mrb[34].mxu0 %vm347_vm3, %v5222_v47  ;;  %v3576_v47 = vld [vmem:[%s6683_s3 + $0x48] sm:$0xff] }
 0x103   : > { %4281 = vmatprep.mubr.msk.f32.mxu0 %vm347_vm3, %v5233_v48  ;;  %v4533_v48 = vpack.c.bf16 %v3576_v47, %v3575_v46 }
 0x104   : > { %v5621_v20 = vpop.f32.mrb[8].mxu1 }
 0x105   : > { %v5623_v21 = vpop.f32.mrb[9].mxu1  ;;  %4534 = vmatprep.subr.bf16.mxu1 %v4533_v48 }
 0x106   : > { %4282 = vmatmul.mubr.msk.f32.gmra.mrb[36].mxu0 %vm347_vm3, %v5236_v49  ;;  %4536 = vmatpush3.bf16.msra.mxu1 %v4533_v48 }
 0x107   : > { %4284 = vmatprep.mubr.msk.f32.mxu0 %vm347_vm3, %v5247_v50 }
 0x108   : > { %v5625_v22 = vpop.f32.mrb[10].mxu1 }
 0x109   : > { %v5627_v23 = vpop.f32.mrb[11].mxu1 }
 0x10a   : > { %4285 = vmatmul.mubr.msk.f32.gmra.mrb[38].mxu0 %vm347_vm3, %v5250_v51 }
 0x10b   : > { %4287 = vmatprep.mubr.msk.f32.mxu0 %vm347_vm3, %v5261_v52 }
 0x10c   : > { %v5629_v24 = vpop.f32.mrb[12].mxu1 }
 0x10d   : > { %v5631_v25 = vpop.f32.mrb[13].mxu1 }
 0x10e   : > { %4288 = vmatmul.mubr.msk.f32.gmra.mrb[40].mxu0 %vm347_vm3, %v5264_v53 }
 0x10f   : > { %4290 = vmatprep.mubr.msk.f32.mxu0 %vm347_vm3, %v5275_v54 }
 0x110   : > { %v5633_v26 = vpop.f32.mrb[14].mxu1 }
 0x111   : > { %v5635_v27 = vpop.f32.mrb[15].mxu1 }
 0x112   : > { %4291 = vmatmul.mubr.msk.f32.gmra.mrb[42].mxu0 %vm347_vm3, %v5278_v55 }
 0x113   : > { %4293 = vmatprep.mubr.msk.f32.mxu0 %vm347_vm3, %v5289_v56 }
 0x114   : > { %v5637_v28 = vpop.f32.mrb[16].mxu1 }
 0x115   : > { %v5639_v29 = vpop.f32.mrb[17].mxu1 }
 0x116   : > { %4294 = vmatmul.mubr.msk.f32.gmra.mrb[44].mxu0 %vm347_vm3, %v5292_v57 }
 0x117   : > { %4296 = vmatprep.mubr.msk.f32.mxu0 %vm347_vm3, %v5303_v58  ;;  %v3577_v58 = vld [vmem:[%s6683_s3 + $0x50] sm:$0xff] }
 0x118   : > { %v5641_v30 = vpop.f32.mrb[18].mxu1 }
 0x119   : > { %v5643_v31 = vpop.f32.mrb[19].mxu1 }
 0x11a   : > { %4297 = vmatmul.mubr.msk.f32.gmra.mrb[46].mxu0 %vm347_vm3, %v5306_v59  ;;  %v3578_v59 = vld [vmem:[%s6683_s3 + $0x58] sm:$0xff] }
 0x11b   : > { %4299 = vmatprep.mubr.msk.f32.mxu0 %vm347_vm3, %v5317_v60 }
 0x11c   : > { %v5645_v32 = vpop.f32.mrb[20].mxu1 }
 0x11d   : > { %v5647_v33 = vpop.f32.mrb[21].mxu1 }
 0x11e   : > { %4300 = vmatmul.mubr.msk.f32.gmra.mrb[48].mxu0 %vm347_vm3, %v5320_v61  ;;  %v4537_v61 = vpack.c.bf16 %v3578_v59, %v3577_v58 }
 0x11f   : > { %4302 = vmatprep.mubr.msk.f32.mxu0 %vm347_vm3, %v5331_v62 }
 0x120   : > { %v5649_v34 = vpop.f32.mrb[22].mxu1  ;;  %4538 = vmatprep.subr.bf16.mxu1 %v4537_v61 }
 0x121   : > { %v5651_v35 = vpop.f32.mrb[23].mxu1  ;;  %4540 = vmatpush3.bf16.msra.mxu1 %v4537_v61 }
 0x122   : > { %4303 = vmatmul.mubr.msk.f32.gmra.mrb[50].mxu0 %vm347_vm3, %v5334_v63  ;;  %v3579_v63 = vld [vmem:[%s6683_s3 + $0x60] sm:$0xff] }
 0x123   : > { %4305 = vmatprep.mubr.msk.f32.mxu0 %vm347_vm3, %v5345_v0  ;;  %v3580_v0 = vld [vmem:[%s6683_s3 + $0x68] sm:$0xff] }
 0x124   : > { %v5653_v36 = vpop.f32.mrb[24].mxu1 }
 0x125   : > { %v5655_v37 = vpop.f32.mrb[25].mxu1 }
 0x126   : > { %4306 = vmatmul.mubr.msk.f32.gmra.mrb[52].mxu0 %vm347_vm3, %v5348_v1 }
 0x127   : > { %4308 = vmatprep.mubr.msk.f32.mxu0 %vm347_vm3, %v5359_v2  ;;  %v4541_v2 = vpack.c.bf16 %v3580_v0, %v3579_v63 }
 0x128   : > { %v5657_v38 = vpop.f32.mrb[26].mxu1 }
 0x129   : > { %v5659_v39 = vpop.f32.mrb[27].mxu1  ;;  %4542 = vmatprep.subr.bf16.mxu1 %v4541_v2 }
 0x12a   : > { %4309 = vmatmul.mubr.msk.f32.gmra.mrb[54].mxu0 %vm347_vm3, %v5362_v3  ;;  %4544 = vmatpush3.bf16.msra.mxu1 %v4541_v2 }
 0x12b   : > { %4311 = vmatprep.mubr.msk.f32.mxu0 %vm347_vm3, %v5373_v4  ;;  %v3581_v4 = vld [vmem:[%s6683_s3 + $0x70] sm:$0xff] }
 0x12c   : > { %v5661_v40 = vpop.f32.mrb[28].mxu1 }
 0x12d   : > { %v5663_v41 = vpop.f32.mrb[29].mxu1 }
 0x12e   : > { %4312 = vmatmul.mubr.msk.f32.gmra.mrb[56].mxu0 %vm347_vm3, %v5376_v5  ;;  %v3582_v5 = vld [vmem:[%s6683_s3 + $0x78] sm:$0xff] }
 0x12f   : > { %4314 = vmatprep.mubr.msk.f32.mxu0 %vm347_vm3, %v5387_v6 }
 0x130   : > { %v5665_v42 = vpop.f32.mrb[30].mxu1 }
 0x131   : > { %v5667_v43 = vpop.f32.mrb[31].mxu1 }
 0x132   : > { %4315 = vmatmul.mubr.msk.f32.gmra.mrb[58].mxu0 %vm347_vm3, %v5390_v7  ;;  %v4545_v7 = vpack.c.bf16 %v3582_v5, %v3581_v4 }
 0x133   : > { %4317 = vmatprep.mubr.msk.f32.mxu0 %vm347_vm3, %v5401_v8  ;;  %v5728_v8 = vld [vmem:[%s6682_s2] ss:$0 sm:$0xff] }
 0x134   : > { %v5669_v44 = vpop.f32.mrb[32].mxu1  ;;  %4546 = vmatprep.subr.bf16.mxu1 %v4545_v7 }
 0x135   : > { %v5671_v45 = vpop.f32.mrb[33].mxu1  ;;  %4548 = vmatpush3.bf16.msra.mxu1 %v4545_v7 }
 0x136   : > { %4318 = vmatmul.mubr.msk.f32.gmra.mrb[60].mxu0 %vm347_vm3, %v5404_v9 }
 0x137   : > { %4320 = vmatprep.mubr.msk.f32.mxu0 %vm347_vm3, %v5469_v12 }
 0x138   : > { %v5679_v49 = vpop.f32.mrb[34].mxu1 }
 0x139   : > { %v5681_v50 = vpop.f32.mrb[35].mxu1 }
 0x13a   : > { %4321 = vmatmul.mubr.msk.f32.gmra.mrb[62].mxu0 %vm347_vm3, %v341_v15 }
 0x13c   : > { %v5683_v51 = vpop.f32.mrb[36].mxu1 }
 0x13d   : > { %v5685_v52 = vpop.f32.mrb[37].mxu1 }
 0x140   : > { %v5687_v53 = vpop.f32.mrb[38].mxu1 }
 0x141   : > { %v5689_v54 = vpop.f32.mrb[39].mxu1 }
 0x144   : > { %v5691_v55 = vpop.f32.mrb[40].mxu1 }
 0x145   : > { %v5693_v56 = vpop.f32.mrb[41].mxu1 }
 0x148   : > { %v5695_v57 = vpop.f32.mrb[42].mxu1 }
 0x149   : > { %v5703_v60 = vpop.f32.mrb[43].mxu1 }
 0x14c   : > { %v5705_v62 = vpop.f32.mrb[44].mxu1 }
 0x14d   : > { %v5713_v1 = vpop.f32.mrb[45].mxu1 }
 0x150   : > { %v5715_v3 = vpop.f32.mrb[46].mxu1 }
 0x151   : > { %v5723_v6 = vpop.f32.mrb[47].mxu1 }
 0x152   : > { %6698 = vst [vmem:[#allocation5_spill] sm:$0xff] %v5723_v6 }
 0x191   : > { %v4229_v9 = vpop.f32.mrb[0].mxu0 }
 0x192   : > { %v1786_v12 = vadd.f32 %v4229_v9, %v5728_v8  ;;  %v1395_v15 = vpop.f32.mrb[1].mxu0 }
 0x193   : > { %v1785_v46 = vadd.f32 %v5728_v8, %v1395_v15 }
 0x194   : > { %v1850_v47 = vmax.f32 %v1786_v12, 0.0 }
 0x195   : > { %v1849_v48 = vmax.f32 %v1785_v46, 0.0  ;;  %v4232_v58 = vpop.f32.mrb[2].mxu0 }
 0x196   : > { %v1788_v59 = vadd.f32 %v4232_v58, %v5728_v8  ;;  %v1405_v61 = vpop.f32.mrb[3].mxu0 }
 0x197   : > { %v1787_v63 = vadd.f32 %v5728_v8, %v1405_v61  ;;  %v5734_v0 = vmax.f32 %v1849_v48, %v1850_v47 }
 0x198   : > { %v1852_v2 = vmax.f32 %v1788_v59, 0.0 }
 0x199   : > { %v1851_v4 = vmax.f32 %v1787_v63, 0.0  ;;  %1977 = vrot.lane.b32.xlu0 %v5734_v0, %s4888_s20  ;;  %v4235_v5 = vpop.f32.mrb[4].mxu0 }
 0x19a   : > { %v1790_v7 = vadd.f32 %v4235_v5, %v5728_v8  ;;  %v1415_v9 = vpop.f32.mrb[5].mxu0 }
 0x19b   : > { %v5739_v12 = vmax.f32 %v1851_v4, %v1852_v2  ;;  %v1789_v15 = vadd.f32 %v5728_v8, %v1415_v9 }
 0x19c   : > { %v1854_v46 = vmax.f32 %v1790_v7, 0.0 }
 0x19d   : > { %6699 = vst [vmem:[#allocation6_spill] sm:$0xff] %v5739_v12  ;;  %v1853_v58 = vmax.f32 %v1789_v15, 0.0  ;;  %1979 = vrot.lane.b32.xlu0 %v5739_v12, %s4888_s20  ;;  %v4238_v47 = vpop.f32.mrb[6].mxu0 }
 0x19e   : > { %v1792_v48 = vadd.f32 %v4238_v47, %v5728_v8  ;;  %v1425_v59 = vpop.f32.mrb[7].mxu0 }
 0x19f   : > { %v1791_v61 = vadd.f32 %v5728_v8, %v1425_v59  ;;  %v5746_v63 = vmax.f32 %v1853_v58, %v1854_v46 }
 0x1a0   : > { %v1856_v6 = vmax.f32 %v1792_v48, 0.0 }
 0x1a1   : > { %6700 = vst [vmem:[#allocation7_spill] sm:$0xff] %v5746_v63  ;;  %v1855_v5 = vmax.f32 %v1791_v61, 0.0  ;;  %1981 = vrot.lane.b32.xlu1 %v5746_v63, %s4888_s20  ;;  %v4241_v2 = vpop.f32.mrb[8].mxu0 }
 0x1a2   : > { %v1794_v4 = vadd.f32 %v4241_v2, %v5728_v8  ;;  %v1435_v7 = vpop.f32.mrb[9].mxu0 }
 0x1a3   : > { %v5751_v9 = vmax.f32 %v1855_v5, %v1856_v6  ;;  %v1793_v15 = vadd.f32 %v5728_v8, %v1435_v7 }
 0x1a4   : > { %v1858_v12 = vmax.f32 %v1794_v4, 0.0 }
 0x1a5   : > { %6701 = vst [vmem:[#allocation8_spill] sm:$0xff] %v5751_v9  ;;  %v1857_v47 = vmax.f32 %v1793_v15, 0.0  ;;  %1983 = vrot.lane.b32.xlu1 %v5751_v9, %s4888_s20  ;;  %v4244_v46 = vpop.f32.mrb[10].mxu0 }
 0x1a6   : > { %v1796_v58 = vadd.f32 %v4244_v46, %v5728_v8  ;;  %v1445_v48 = vpop.f32.mrb[11].mxu0 }
 0x1a7   : > { %v5757_v59 = vmax.f32 %v1857_v47, %v1858_v12  ;;  %v1795_v61 = vadd.f32 %v5728_v8, %v1445_v48 }
 0x1a8   : > { %v1860_v63 = vmax.f32 %v1796_v58, 0.0 }
 0x1a9   : > { %6702 = vst [vmem:[#allocation9_spill] sm:$0xff] %v5757_v59  ;;  %v1859_v2 = vmax.f32 %v1795_v61, 0.0  ;;  %1985 = vrot.lane.b32.xlu0 %v5757_v59, %s4888_s20  ;;  %v4247_v6 = vpop.f32.mrb[12].mxu0 }
 0x1aa   : > { %v1798_v5 = vadd.f32 %v4247_v6, %v5728_v8  ;;  %v1455_v4 = vpop.f32.mrb[13].mxu0 }
 0x1ab   : > { %v5763_v7 = vmax.f32 %v1859_v2, %v1860_v63  ;;  %v1797_v15 = vadd.f32 %v5728_v8, %v1455_v4 }
 0x1ac   : > { %v1862_v9 = vmax.f32 %v1798_v5, 0.0 }
 0x1ad   : > { %v1861_v46 = vmax.f32 %v1797_v15, 0.0  ;;  %1987 = vrot.lane.b32.xlu1 %v5763_v7, %s4888_s20  ;;  %v4250_v12 = vpop.f32.mrb[14].mxu0 }
 0x1ae   : > { %v1800_v47 = vadd.f32 %v4250_v12, %v5728_v8  ;;  %v1465_v58 = vpop.f32.mrb[15].mxu0 }
 0x1af   : > { %v5769_v48 = vmax.f32 %v1861_v46, %v1862_v9  ;;  %v1799_v61 = vadd.f32 %v5728_v8, %v1465_v58 }
 0x1b0   : > { %v1864_v59 = vmax.f32 %v1800_v47, 0.0 }
 0x1b1   : > { %6703 = vst [vmem:[#allocation10_spill] sm:$0xff] %v5769_v48  ;;  %v1863_v6 = vmax.f32 %v1799_v61, 0.0  ;;  %1989 = vrot.lane.b32.xlu0 %v5769_v48, %s4888_s20  ;;  %v4253_v63 = vpop.f32.mrb[16].mxu0 }
 0x1b2   : > { %v4583_v2 = vadd.f32 %v4253_v63, %v5595_v10  ;;  %v1475_v5 = vpop.f32.mrb[17].mxu0 }
 0x1b3   : > { %v5775_v4 = vmax.f32 %v1863_v6, %v1864_v59  ;;  %v4584_v15 = vadd.f32 %v1475_v5, %v5597_v11 }
 0x1b4   : > { %v1802_v12 = vadd.f32 %v4583_v2, %v5728_v8 }
 0x1b5   : > { %6704 = vst [vmem:[#allocation11_spill] sm:$0xff] %v5775_v4  ;;  %v1801_v9 = vadd.f32 %v4584_v15, %v5728_v8  ;;  %1991 = vrot.lane.b32.xlu1 %v5775_v4, %s4888_s20  ;;  %v4256_v46 = vpop.f32.mrb[18].mxu0 }
 0x1b6   : > { %v1866_v47 = vmax.f32 %v1802_v12, 0.0  ;;  %v4585_v58 = vadd.f32 %v4256_v46, %v5603_v13  ;;  %v1485_v61 = vpop.f32.mrb[19].mxu0 }
 0x1b7   : > { %v1865_v48 = vmax.f32 %v1801_v9, 0.0  ;;  %v4586_v10 = vadd.f32 %v1485_v61, %v5605_v14 }
 0x1b8   : > { %v1804_v59 = vadd.f32 %v4585_v58, %v5728_v8 }
 0x1b9   : > { %v1803_v6 = vadd.f32 %v4586_v10, %v5728_v8  ;;  %v4259_v11 = vpop.f32.mrb[20].mxu0  ;;  %v5786_v63 = vmax.f32 %v1865_v48, %v1866_v47 }
 0x1ba   : > { %v1868_v2 = vmax.f32 %v1804_v59, 0.0  ;;  %v4587_v5 = vadd.f32 %v4259_v11, %v5612_v16  ;;  %v1495_v15 = vpop.f32.mrb[21].mxu0 }
 0x1bb   : > { %v1867_v4 = vmax.f32 %v1803_v6, 0.0  ;;  %v4588_v12 = vadd.f32 %v1495_v15, %v5614_v17  ;;  %1993 = vrot.lane.b32.xlu0 %v5786_v63, %s4888_s20 }
 0x1bc   : > { %v1806_v13 = vadd.f32 %v4587_v5, %v5728_v8 }
 0x1bd   : > { %v1805_v14 = vadd.f32 %v4588_v12, %v5728_v8  ;;  %v4262_v9 = vpop.f32.mrb[22].mxu0  ;;  %v5794_v46 = vmax.f32 %v1867_v4, %v1868_v2 }
 0x1be   : > { %v1870_v58 = vmax.f32 %v1806_v13, 0.0  ;;  %v4589_v48 = vadd.f32 %v4262_v9, %v5617_v18  ;;  %v1505_v47 = vpop.f32.mrb[23].mxu0 }
 0x1bf   : > { %v1869_v61 = vmax.f32 %v1805_v14, 0.0  ;;  %v4590_v16 = vadd.f32 %v1505_v47, %v5619_v19  ;;  %1995 = vrot.lane.b32.xlu1 %v5794_v46, %s4888_s20 }
 0x1c0   : > { %v1808_v17 = vadd.f32 %v4589_v48, %v5728_v8 }
 0x1c1   : > { %v1807_v10 = vadd.f32 %v4590_v16, %v5728_v8  ;;  %v4265_v59 = vpop.f32.mrb[24].mxu0  ;;  %v5802_v6 = vmax.f32 %v1869_v61, %v1870_v58 }
 0x1c2   : > { %v1872_v11 = vmax.f32 %v1808_v17, 0.0  ;;  %v4591_v4 = vadd.f32 %v4265_v59, %v5621_v20  ;;  %v1515_v2 = vpop.f32.mrb[25].mxu0 }
 0x1c3   : > { %v1871_v5 = vmax.f32 %v1807_v10, 0.0  ;;  %v4592_v18 = vadd.f32 %v1515_v2, %v5623_v21  ;;  %1997 = vrot.lane.b32.xlu0 %v5802_v6, %s4888_s20 }
 0x1c4   : > { %v1810_v19 = vadd.f32 %v4591_v4, %v5728_v8 }
 0x1c5   : > { %v1809_v15 = vadd.f32 %v4592_v18, %v5728_v8  ;;  %v4268_v12 = vpop.f32.mrb[26].mxu0  ;;  %v5810_v13 = vmax.f32 %v1871_v5, %v1872_v11 }
 0x1c6   : > { %v1874_v14 = vmax.f32 %v1810_v19, 0.0  ;;  %v4593_v9 = vadd.f32 %v4268_v12, %v5625_v22  ;;  %v1525_v58 = vpop.f32.mrb[27].mxu0 }
 0x1c7   : > { %v1873_v48 = vmax.f32 %v1809_v15, 0.0  ;;  %v4594_v20 = vadd.f32 %v1525_v58, %v5627_v23  ;;  %1999 = vrot.lane.b32.xlu1 %v5810_v13, %s4888_s20 }
 0x1c8   : > { %v1812_v21 = vadd.f32 %v4593_v9, %v5728_v8  ;;  %v2149_v9 = vld [vmem:[%s6683_s3 + $0x8] sm:$0xff] }
 0x1c9   : > { %v1811_v47 = vadd.f32 %v4594_v20, %v5728_v8  ;;  %v4271_v61 = vpop.f32.mrb[28].mxu0  ;;  %v5818_v16 = vmax.f32 %v1873_v48, %v1874_v14  ;;  %v2148_v14 = vld [vmem:[%s6683_s3] sm:$0xff] }
 0x1ca   : > { %v1876_v17 = vmax.f32 %v1812_v21, 0.0  ;;  %v4595_v10 = vadd.f32 %v4271_v61, %v5629_v24  ;;  %v1535_v59 = vpop.f32.mrb[29].mxu0  ;;  %v5842_v20 = vpack.c.bf16 %v2149_v9, %v2148_v14 }
 0x1cb   : > { %v1875_v11 = vmax.f32 %v1811_v47, 0.0  ;;  %v4596_v22 = vadd.f32 %v1535_v59, %v5631_v25  ;;  %2001 = vrot.lane.b32.xlu0 %v5818_v16, %s4888_s20 }
 0x1cc   : > { %v1814_v23 = vadd.f32 %v4595_v10, %v5728_v8  ;;  %4550 = vmatprep.subr.bf16.mxu1 %v5842_v20 }
 0x1cd   : > { %v1813_v4 = vadd.f32 %v4596_v22, %v5728_v8  ;;  %v4274_v2 = vpop.f32.mrb[30].mxu0  ;;  %v5826_v5 = vmax.f32 %v1875_v11, %v1876_v17 }
 0x1ce   : > { %v1878_v18 = vmax.f32 %v1814_v23, 0.0  ;;  %v4597_v19 = vadd.f32 %v4274_v2, %v5633_v26  ;;  %v1545_v15 = vpop.f32.mrb[31].mxu0 }
 0x1cf   : > { %v1877_v12 = vmax.f32 %v1813_v4, 0.0  ;;  %v4598_v24 = vadd.f32 %v1545_v15, %v5635_v27  ;;  %2003 = vrot.lane.b32.xlu1 %v5826_v5, %s4888_s20 }
 0x1d0   : > { %v1816_v25 = vadd.f32 %v4597_v19, %v5728_v8 }
 0x1d1   : > { %v1815_v58 = vadd.f32 %v4598_v24, %v5728_v8  ;;  %v4277_v26 = vpop.f32.mrb[32].mxu0  ;;  %v5840_v48 = vmax.f32 %v1877_v12, %v1878_v18 }
 0x1d2   : > { %v1880_v27 = vmax.f32 %v1816_v25, 0.0  ;;  %v4599_v21 = vadd.f32 %v4277_v26, %v5637_v28  ;;  %v1555_v47 = vpop.f32.mrb[33].mxu0 }
 0x1d3   : > { %v1879_v61 = vmax.f32 %v1815_v58, 0.0  ;;  %v4600_v17 = vadd.f32 %v1555_v47, %v5639_v29  ;;  %2005 = vrot.lane.b32.xlu0 %v5840_v48, %s4888_s20 }
 0x1d4   : > { %v1818_v10 = vadd.f32 %v4599_v21, %v5728_v8 }
 0x1d5   : > { %v1817_v59 = vadd.f32 %v4600_v17, %v5728_v8  ;;  %v4280_v11 = vpop.f32.mrb[34].mxu0  ;;  %v5851_v22 = vmax.f32 %v1879_v61, %v1880_v27 }
 0x1d6   : > { %v1882_v23 = vmax.f32 %v1818_v10, 0.0  ;;  %v4601_v4 = vadd.f32 %v4280_v11, %v5641_v30  ;;  %v1565_v28 = vpop.f32.mrb[35].mxu0 }
 0x1d7   : > { %v1881_v2 = vmax.f32 %v1817_v59, 0.0  ;;  %v4602_v18 = vadd.f32 %v1565_v28, %v5643_v31  ;;  %2007 = vrot.lane.b32.xlu1 %v5851_v22, %s4888_s20 }
 0x1d8   : > { %v1820_v29 = vadd.f32 %v4601_v4, %v5728_v8 }
 0x1d9   : > { %v1819_v19 = vadd.f32 %v4602_v18, %v5728_v8  ;;  %v4283_v15 = vpop.f32.mrb[36].mxu0  ;;  %v5859_v12 = vmax.f32 %v1881_v2, %v1882_v23 }
 0x1da   : > { %v1884_v24 = vmax.f32 %v1820_v29, 0.0  ;;  %v4603_v25 = vadd.f32 %v4283_v15, %v5645_v32  ;;  %v1575_v14 = vpop.f32.mrb[37].mxu0 }
 0x1db   : > { %v1883_v9 = vmax.f32 %v1819_v19, 0.0  ;;  %v4604_v30 = vadd.f32 %v1575_v14, %v5647_v33  ;;  %2009 = vrot.lane.b32.xlu0 %v5859_v12, %s4888_s20 }
 0x1dc   : > { %v1822_v31 = vadd.f32 %v4603_v25, %v5728_v8 }
 0x1dd   : > { %v1821_v58 = vadd.f32 %v4604_v30, %v5728_v8  ;;  %v4286_v26 = vpop.f32.mrb[38].mxu0  ;;  %v5867_v27 = vmax.f32 %v1883_v9, %v1884_v24 }
 0x1de   : > { %v1886_v21 = vmax.f32 %v1822_v31, 0.0  ;;  %v4605_v47 = vadd.f32 %v4286_v26, %v5649_v34  ;;  %v1585_v61 = vpop.f32.mrb[39].mxu0 }
 0x1df   : > { %v1885_v17 = vmax.f32 %v1821_v58, 0.0  ;;  %v4606_v32 = vadd.f32 %v1585_v61, %v5651_v35  ;;  %2011 = vrot.lane.b32.xlu1 %v5867_v27, %s4888_s20 }
 0x1e0   : > { %v1824_v33 = vadd.f32 %v4605_v47, %v5728_v8 }
 0x1e1   : > { %v1823_v10 = vadd.f32 %v4606_v32, %v5728_v8  ;;  %v4289_v59 = vpop.f32.mrb[40].mxu0  ;;  %v5875_v11 = vmax.f32 %v1885_v17, %v1886_v21 }
 0x1e2   : > { %v1888_v23 = vmax.f32 %v1824_v33, 0.0  ;;  %v4607_v4 = vadd.f32 %v4289_v59, %v5653_v36  ;;  %v1595_v28 = vpop.f32.mrb[41].mxu0 }
 0x1e3   : > { %v1887_v2 = vmax.f32 %v1823_v10, 0.0  ;;  %v4608_v34 = vadd.f32 %v1595_v28, %v5655_v37  ;;  %2013 = vrot.lane.b32.xlu0 %v5875_v11, %s4888_s20 }
 0x1e4   : > { %v1826_v35 = vadd.f32 %v4607_v4, %v5728_v8 }
 0x1e5   : > { %v1825_v18 = vadd.f32 %v4608_v34, %v5728_v8  ;;  %v4292_v29 = vpop.f32.mrb[42].mxu0  ;;  %v5883_v19 = vmax.f32 %v1887_v2, %v1888_v23 }
 0x1e6   : > { %v1890_v15 = vmax.f32 %v1826_v35, 0.0  ;;  %v4609_v24 = vadd.f32 %v4292_v29, %v5657_v38  ;;  %v1605_v25 = vpop.f32.mrb[43].mxu0 }
 0x1e7   : > { %v1889_v14 = vmax.f32 %v1825_v18, 0.0  ;;  %v4610_v36 = vadd.f32 %v1605_v25, %v5659_v39  ;;  %2015 = vrot.lane.b32.xlu1 %v5883_v19, %s4888_s20 }
 0x1e8   : > { %v1828_v37 = vadd.f32 %v4609_v24, %v5728_v8 }
 0x1e9   : > { %v1827_v9 = vadd.f32 %v4610_v36, %v5728_v8  ;;  %v4295_v30 = vpop.f32.mrb[44].mxu0  ;;  %v5891_v31 = vmax.f32 %v1889_v14, %v1890_v15 }
 0x1ea   : > { %v1892_v58 = vmax.f32 %v1828_v37, 0.0  ;;  %v4611_v26 = vadd.f32 %v4295_v30, %v5661_v40  ;;  %v1615_v21 = vpop.f32.mrb[45].mxu0 }
 0x1eb   : > { %v1891_v47 = vmax.f32 %v1827_v9, 0.0  ;;  %v4612_v38 = vadd.f32 %v1615_v21, %v5663_v41  ;;  %2017 = vrot.lane.b32.xlu0 %v5891_v31, %s4888_s20 }
 0x1ec   : > { %v1830_v39 = vadd.f32 %v4611_v26, %v5728_v8 }
 0x1ed   : > { %v1829_v61 = vadd.f32 %v4612_v38, %v5728_v8  ;;  %v4298_v17 = vpop.f32.mrb[46].mxu0  ;;  %v5899_v32 = vmax.f32 %v1891_v47, %v1892_v58 }
 0x1ee   : > { %v1894_v33 = vmax.f32 %v1830_v39, 0.0  ;;  %v4613_v10 = vadd.f32 %v4298_v17, %v5665_v42  ;;  %v1625_v59 = vpop.f32.mrb[47].mxu0 }
 0x1ef   : > { %v1893_v23 = vmax.f32 %v1829_v61, 0.0  ;;  %v4614_v40 = vadd.f32 %v1625_v59, %v5667_v43  ;;  %2019 = vrot.lane.b32.xlu1 %v5899_v32, %s4888_s20  ;;  %v2105_v61 = vlaneseq }
 0x1f0   : > { %v1832_v41 = vadd.f32 %v4613_v10, %v5728_v8 }
 0x1f1   : > { %v1831_v4 = vadd.f32 %v4614_v40, %v5728_v8  ;;  %v4301_v28 = vpop.f32.mrb[48].mxu0  ;;  %v5907_v2 = vmax.f32 %v1893_v23, %v1894_v33 }
 0x1f2   : > { %v1896_v34 = vmax.f32 %v1832_v41, 0.0  ;;  %v4615_v35 = vadd.f32 %v4301_v28, %v5669_v44  ;;  %v1635_v18 = vpop.f32.mrb[49].mxu0  ;;  %v5938_v28 = vand.u32 127, %v2105_v61 }
 0x1f3   : > { %v1895_v29 = vmax.f32 %v1831_v4, 0.0  ;;  %v4616_v42 = vadd.f32 %v1635_v18, %v5671_v45  ;;  %2021 = vrot.lane.b32.xlu0 %v5907_v2, %s4888_s20  ;;  %v2106_v4 = vshrl.u32 %v2105_v61, 7 }
 0x1f4   : > { %v1834_v43 = vadd.f32 %v4615_v35, %v5728_v8  ;;  %vm2110_vm5 = vcmp.lt.s32.totalorder %v5938_v28, 16  ;;  %vm2113_vm7 = vcmp.ge.s32.totalorder %v5938_v28, 48  ;;  %vm3294_vm13 = vcmp.eq.s32.totalorder %v5938_v28, 0 }
 0x1f5   : > { %v1833_v15 = vadd.f32 %v4616_v42, %v5728_v8  ;;  %v4304_v24 = vpop.f32.mrb[50].mxu0  ;;  %v5915_v25 = vmax.f32 %v1895_v29, %v1896_v34  ;;  %vm2109_vm4 = vcmp.eq.s32.totalorder %v2106_v4, 0  ;;  %vm2112_vm6 = vcmp.eq.s32.totalorder %v2106_v4, 7  ;;  %v6707_v4 = vld [vmem:[#allocation5_spill] sm:$0xff] }
 0x1f6   : > { %v1898_v14 = vmax.f32 %v1834_v43, 0.0  ;;  %v4617_v36 = vadd.f32 %v4304_v24, %v5679_v49  ;;  %v1645_v37 = vpop.f32.mrb[51].mxu0  ;;  %vm2111_vm8 = vmand %vm2109_vm4, %vm2110_vm5 }
 0x1f7   : > { %v1897_v9 = vmax.f32 %v1833_v15, 0.0  ;;  %v4618_v44 = vadd.f32 %v1645_v37, %v5681_v50  ;;  %2023 = vrot.lane.b32.xlu1 %v5915_v25, %s4888_s20  ;;  %vm2114_vm9 = vmand %vm2112_vm6, %vm2113_vm7 }
 0x1f8   : > { %v1836_v45 = vadd.f32 %v4617_v36, %v5728_v8  ;;  %vm5963_vm10 = vmor %vm2111_vm8, %vm2114_vm9 }
 0x1f9   : > { %v1835_v30 = vadd.f32 %v4618_v44, %v5728_v8  ;;  %v4307_v58 = vpop.f32.mrb[52].mxu0  ;;  %v5923_v26 = vmax.f32 %v1897_v9, %v1898_v14 }
 0x1fa   : > { %v1900_v21 = vmax.f32 %v1836_v45, 0.0  ;;  %v4619_v47 = vadd.f32 %v4307_v58, %v5683_v51  ;;  %v1655_v38 = vpop.f32.mrb[53].mxu0 }
 0x1fb   : > { %v1899_v39 = vmax.f32 %v1835_v30, 0.0  ;;  %v4620_v49 = vadd.f32 %v1655_v38, %v5685_v52  ;;  %2025 = vrot.lane.b32.xlu0 %v5923_v26, %s4888_s20 }
 0x1fc   : > { %v1838_v50 = vadd.f32 %v4619_v47, %v5728_v8 }
 0x1fd   : > { %v1837_v17 = vadd.f32 %v4620_v49, %v5728_v8  ;;  %v4310_v33 = vpop.f32.mrb[54].mxu0  ;;  %v5931_v10 = vmax.f32 %v1899_v39, %v1900_v21 }
 0x1fe   : > { %v1902_v59 = vmax.f32 %v1838_v50, 0.0  ;;  %v4621_v23 = vadd.f32 %v4310_v33, %v5687_v53  ;;  %v1665_v40 = vpop.f32.mrb[55].mxu0 }
 0x1ff   : > { %v1901_v51 = vmax.f32 %v1837_v17, 0.0  ;;  %v4622_v41 = vadd.f32 %v1665_v40, %v5689_v54  ;;  %2027 = vrot.lane.b32.xlu1 %v5931_v10, %s4888_s20 }
 0x200   : > { %v1840_v52 = vadd.f32 %v4621_v23, %v5728_v8 }
 0x201   : > { %v1839_v34 = vadd.f32 %v4622_v41, %v5728_v8  ;;  %v4313_v35 = vpop.f32.mrb[56].mxu0  ;;  %v5941_v18 = vmax.f32 %v1901_v51, %v1902_v59  ;;  %v2150_v41 = vld [vmem:[%s6683_s3 + $0x10] sm:$0xff] }
 0x202   : > { %v1904_v29 = vmax.f32 %v1840_v52, 0.0  ;;  %v4623_v53 = vadd.f32 %v4313_v35, %v5691_v55  ;;  %v1675_v42 = vpop.f32.mrb[57].mxu0 }
 0x203   : > { %v1903_v43 = vmax.f32 %v1839_v34, 0.0  ;;  %v4624_v54 = vadd.f32 %v1675_v42, %v5693_v56  ;;  %2029 = vrot.lane.b32.xlu0 %v5941_v18, %s4888_s20 }
 0x204   : > { %v1842_v15 = vadd.f32 %v4623_v53, %v5728_v8 }
 0x205   : > { %v1841_v24 = vadd.f32 %v4624_v54, %v5728_v8  ;;  %v4316_v14 = vpop.f32.mrb[58].mxu0  ;;  %v5950_v36 = vmax.f32 %v1903_v43, %v1904_v29  ;;  %v6708_v29 = vld [vmem:[#allocation6_spill] sm:$0xff] }
 0x206   : > { %v1906_v55 = vmax.f32 %v1842_v15, 0.0  ;;  %v4625_v37 = vadd.f32 %v4316_v14, %v5695_v57  ;;  %v1685_v56 = vpop.f32.mrb[59].mxu0  ;;  %v2152_v14 = vld [vmem:[%s6683_s3 + $0x20] sm:$0xff] }
 0x207   : > { %v1905_v9 = vmax.f32 %v1841_v24, 0.0  ;;  %v4626_v44 = vadd.f32 %v1685_v56, %v5703_v60  ;;  %2031 = vrot.lane.b32.xlu1 %v5950_v36, %s4888_s20  ;;  %v6709_v56 = vld [vmem:[#allocation7_spill] sm:$0xff]  ;;  %v3650_v60 = vld [vmem:[%s6683_s3 + $0xa0] sm:$0xff] }
 0x208   : > { %v1844_v45 = vadd.f32 %v4625_v37, %v5728_v8 }
 0x209   : > { %v1843_v30 = vadd.f32 %v4626_v44, %v5728_v8  ;;  %v4319_v58 = vpop.f32.mrb[60].mxu0  ;;  %v5959_v21 = vmax.f32 %v1905_v9, %v1906_v55  ;;  %v2153_v55 = vld [vmem:[%s6683_s3 + $0x28] sm:$0xff] }
 0x20a   : > { %v1908_v47 = vmax.f32 %v1844_v45, 0.0  ;;  %v4627_v38 = vadd.f32 %v4319_v58, %v5705_v62  ;;  %v1695_v57 = vpop.f32.mrb[61].mxu0  ;;  %v4557_v45 = vpack.c.bf16 %v2153_v55, %v2152_v14  ;;  %v2154_v58 = vld [vmem:[%s6683_s3 + $0x30] sm:$0xff] }
 0x20b   : > { %v1907_v39 = vmax.f32 %v1843_v30, 0.0  ;;  %v4628_v49 = vadd.f32 %v1695_v57, %v5713_v1  ;;  %v1978_v50 = vpop.permute.xlu0 %1977  ;;  %2033 = vrot.lane.b32.xlu0 %v5959_v21, %s4888_s20 }
 0x20c   : > { %v1846_v61 = vadd.f32 %v4627_v38, %v5728_v8  ;;  %v2073_v17 = vmax.f32 %v5734_v0, %v1978_v50  ;;  %v2151_v0 = vld [vmem:[%s6683_s3 + $0x18] sm:$0xff]  ;;  %v3646_v50 = vld [vmem:[%s6683_s3 + $0x80] sm:$0xff] }
 0x20d   : > { %v1845_v33 = vadd.f32 %v4628_v49, %v5728_v8  ;;  %v4322_v62 = vpop.f32.mrb[62].mxu0  ;;  %v5972_v59 = vmax.f32 %v1907_v39, %v1908_v47  ;;  %v4553_v54 = vpack.c.bf16 %v2151_v0, %v2150_v41  ;;  %v2155_v47 = vld [vmem:[%s6683_s3 + $0x38] sm:$0xff] }
 0x20e   : > { %v1910_v23 = vmax.f32 %v1846_v61, 0.0  ;;  %v5976_v1 = vsel %vm5963_vm10, 0.0, %v2073_v17  ;;  %v4629_v40 = vadd.f32 %v4322_v62, %v5715_v3  ;;  %v1705_v51 = vpop.f32.mrb[63].mxu0  ;;  %v6710_v38 = vld [vmem:[#allocation8_spill] sm:$0xff]  ;;  %v4561_v39 = vpack.c.bf16 %v2155_v47, %v2154_v58  ;;  %v3647_v61 = vld [vmem:[%s6683_s3 + $0x88] sm:$0xff] }
 0x20f   : > { %v1909_v52 = vmax.f32 %v1845_v33, 0.0  ;;  %v4630_v34 = vadd.f32 %v1705_v51, %v6707_v4  ;;  %4339 = vmatprep.mubr.msk.f32.mxu1 %vm2165_vm11, %v5976_v1  ;;  %v1980_v35 = vpop.permute.xlu0 %1979  ;;  %2035 = vrot.lane.b32.xlu1 %v5972_v59, %s4888_s20  ;;  %v6711_v33 = vld [vmem:[#allocation9_spill] sm:$0xff]  ;;  %v6712_v4 = vld [vmem:[#allocation10_spill] sm:$0xff] }
 0x210   : > { %v1848_v3 = vadd.f32 %v4629_v40, %v5728_v8  ;;  %v2074_v53 = vmax.f32 %v6708_v29, %v1980_v35 }
 0x211   : > { %v1847_v42 = vadd.f32 %v4630_v34, %v5728_v8  ;;  %v5993_v43 = vmax.f32 %v1909_v52, %v1910_v23  ;;  %v6041_v23 = vpack.c.bf16 %v3647_v61, %v3646_v50 }
 0x212   : > { %v1912_v15 = vmax.f32 %v1848_v3, 0.0  ;;  %v5997_v24 = vsel %vm5963_vm10, 0.0, %v2074_v53  ;;  %v6713_v3 = vld [vmem:[#allocation11_spill] sm:$0xff] }
 0x213   : > { %v1911_v37 = vmax.f32 %v1847_v42, 0.0  ;;  %4340 = vmatmul.mubr.msk.f32.vlgmr.msra.gmra.mrb[48].mxu1 %vm2165_vm11, %v5997_v24  ;;  %v1982_v8 = vpop.permute.xlu1 %1981  ;;  %2037 = vrot.lane.b32.xlu0 %v5993_v43, %s4888_s20 }
 0x214   : > { %v2075_v9 = vmax.f32 %v6709_v56, %v1982_v8  ;;  %4552 = vmatpush3.bf16.msra.mxu1 %v5842_v20 }
 0x215   : > { %v6011_v44 = vmax.f32 %v1911_v37, %v1912_v15  ;;  %4554 = vmatprep.subr.bf16.mxu1 %v4553_v54 }
 0x216   : > { %v6015_v30 = vsel %vm5963_vm10, 0.0, %v2075_v9 }
 0x217   : > { %4342 = vmatprep.mubr.msk.f32.mxu1 %vm2165_vm11, %v6015_v30  ;;  %v1984_v20 = vpop.permute.xlu1 %1983  ;;  %2039 = vrot.lane.b32.xlu1 %v6011_v44, %s4888_s20  ;;  %s4890_s20 = smov 96  }
 0x218   : > { %v2076_v57 = vmax.f32 %v6710_v38, %v1984_v20  ;;  %4556 = vmatpush3.bf16.msra.mxu1 %v4553_v54 }
 0x219   : > { %4558 = vmatprep.subr.bf16.mxu1 %v4557_v45 }
 0x21a   : > { %v6030_v49 = vsel %vm5963_vm10, 0.0, %v2076_v57 }
 0x21b   : > { %4343 = vmatmul.mubr.msk.f32.gmra.mrb[50].mxu1 %vm2165_vm11, %v6030_v49  ;;  %v1986_v17 = vpop.permute.xlu0 %1985 }
 0x21c   : > { %v2077_v62 = vmax.f32 %v6711_v33, %v1986_v17  ;;  %4560 = vmatpush3.bf16.msra.mxu1 %v4557_v45 }
 0x21d   : > { %4562 = vmatprep.subr.bf16.mxu1 %v4561_v39 }
 0x21e   : > { %v6045_v40 = vsel %vm5963_vm10, 0.0, %v2077_v62 }
 0x21f   : > { %4345 = vmatprep.mubr.msk.f32.mxu1 %vm2165_vm11, %v6045_v40  ;;  %v1988_v51 = vpop.permute.xlu1 %1987 }
 0x220   : > { %v2078_v41 = vmax.f32 %v5763_v7, %v1988_v51  ;;  %4564 = vmatpush3.bf16.msra.mxu1 %v4561_v39 }
 0x221   : > { %4566 = vmatprep.subr.bf16.mxu1 %v6041_v23 }
 0x222   : > { %v6053_v0 = vsel %vm5963_vm10, 0.0, %v2078_v41 }
 0x223   : > { %4346 = vmatmul.mubr.msk.f32.gmra.mrb[52].mxu1 %vm2165_vm11, %v6053_v0  ;;  %v1990_v52 = vpop.permute.xlu0 %1989 }
 0x224   : > { %v2079_v34 = vmax.f32 %v6712_v4, %v1990_v52 }
 0x226   : > { %v6060_v35 = vsel %vm5963_vm10, 0.0, %v2079_v34 }
 0x227   : > { %4348 = vmatprep.mubr.msk.f32.mxu1 %vm2165_vm11, %v6060_v35  ;;  %v1992_v7 = vpop.permute.xlu1 %1991 }
 0x228   : > { %v2080_v29 = vmax.f32 %v6713_v3, %v1992_v7 }
 0x22a   : > { %v6067_v53 = vsel %vm5963_vm10, 0.0, %v2080_v29 }
 0x22b   : > { %4349 = vmatmul.mubr.msk.f32.gmra.mrb[54].mxu1 %vm2165_vm11, %v6067_v53 }
 0x22d   : > { %v1994_v42 = vpop.permute.xlu0 %1993 }
 0x22e   : > { %v2081_v54 = vmax.f32 %v5786_v63, %v1994_v42 }
 0x230   : > { %v6074_v15 = vsel %vm5963_vm10, 0.0, %v2081_v54 }
 0x231   : > { %4351 = vmatprep.mubr.msk.f32.mxu1 %vm2165_vm11, %v6074_v15  ;;  %v1996_v14 = vpop.permute.xlu1 %1995 }
 0x232   : > { %v2082_v55 = vmax.f32 %v5794_v46, %v1996_v14 }
 0x234   : > { %v6081_v37 = vsel %vm5963_vm10, 0.0, %v2082_v55 }
 0x235   : > { %4352 = vmatmul.mubr.msk.f32.gmra.mrb[56].mxu1 %vm2165_vm11, %v6081_v37  ;;  %v1998_v8 = vpop.permute.xlu0 %1997 }
 0x236   : > { %v2083_v63 = vmax.f32 %v5802_v6, %v1998_v8 }
 0x238   : > { %v6088_v56 = vsel %vm5963_vm10, 0.0, %v2083_v63 }
 0x239   : > { %4354 = vmatprep.mubr.msk.f32.mxu1 %vm2165_vm11, %v6088_v56  ;;  %v2000_v9 = vpop.permute.xlu1 %1999 }
 0x23a   : > { %v2084_v46 = vmax.f32 %v5810_v13, %v2000_v9 }
 0x23c   : > { %v6095_v45 = vsel %vm5963_vm10, 0.0, %v2084_v46 }
 0x23d   : > { %4355 = vmatmul.mubr.msk.f32.gmra.mrb[58].mxu1 %vm2165_vm11, %v6095_v45  ;;  %v2002_v58 = vpop.permute.xlu0 %2001 }
 0x23e   : > { %v2085_v6 = vmax.f32 %v5818_v16, %v2002_v58 }
 0x240   : > { %v6102_v47 = vsel %vm5963_vm10, 0.0, %v2085_v6 }
 0x241   : > { %4357 = vmatprep.mubr.msk.f32.mxu1 %vm2165_vm11, %v6102_v47  ;;  %v2004_v20 = vpop.permute.xlu1 %2003 }
 0x242   : > { %v2086_v13 = vmax.f32 %v5826_v5, %v2004_v20 }
 0x244   : > { %v6109_v38 = vsel %vm5963_vm10, 0.0, %v2086_v13 }
 0x245   : > { %4358 = vmatmul.mubr.msk.f32.gmra.mrb[60].mxu1 %vm2165_vm11, %v6109_v38  ;;  %v2006_v57 = vpop.permute.xlu0 %2005 }
 0x246   : > { %v2087_v16 = vmax.f32 %v5840_v48, %v2006_v57 }
 0x248   : > { %v6116_v39 = vsel %vm5963_vm10, 0.0, %v2087_v16 }
 0x249   : > { %4360 = vmatprep.mubr.msk.f32.mxu1 %vm2165_vm11, %v6116_v39  ;;  %v2008_v50 = vpop.permute.xlu1 %2007 }
 0x24a   : > { %v2088_v5 = vmax.f32 %v5851_v22, %v2008_v50 }
 0x24c   : > { %v6123_v61 = vsel %vm5963_vm10, 0.0, %v2088_v5 }
 0x24d   : > { %4361 = vmatmul.mubr.msk.f32.gmra.mrb[62].mxu1 %vm2165_vm11, %v6123_v61  ;;  %v2010_v17 = vpop.permute.xlu0 %2009 }
 0x24e   : > { %v2089_v48 = vmax.f32 %v5859_v12, %v2010_v17 }
 0x250   : > { %v6130_v33 = vsel %vm5963_vm10, 0.0, %v2089_v48 }
 0x251   : > { %4363 = vmatprep.mubr.msk.f32.mxu1 %vm2165_vm11, %v6130_v33  ;;  %v2012_v62 = vpop.permute.xlu1 %2011 }
 0x252   : > { %v2090_v22 = vmax.f32 %v5867_v27, %v2012_v62 }
 0x254   : > { %v6137_v51 = vsel %vm5963_vm10, 0.0, %v2090_v22 }
 0x255   : > { %4364 = vmatmul.mubr.msk.f32.gmra.mrb[64].mxu1 %vm2165_vm11, %v6137_v51  ;;  %v2014_v41 = vpop.permute.xlu0 %2013 }
 0x256   : > { %v2091_v12 = vmax.f32 %v5875_v11, %v2014_v41 }
 0x258   : > { %v6144_v52 = vsel %vm5963_vm10, 0.0, %v2091_v12  ;;  %v3648_v12 = vld [vmem:[%s6683_s3 + $0x90] sm:$0xff] }
 0x259   : > { %4366 = vmatprep.mubr.msk.f32.mxu1 %vm2165_vm11, %v6144_v52  ;;  %v2016_v4 = vpop.permute.xlu1 %2015 }
 0x25a   : > { %v2092_v27 = vmax.f32 %v5883_v19, %v2016_v4  ;;  %v4889_v4 = vmov 0.0  }
 0x25c   : > { %v6151_v34 = vsel %vm5963_vm10, 0.0, %v2092_v27 }
 0x25d   : > { %4367 = vmatmul.mubr.msk.f32.gmra.mrb[66].mxu1 %vm2165_vm11, %v6151_v34  ;;  %v2018_v7 = vpop.permute.xlu0 %2017 }
 0x25e   : > { %v2093_v11 = vmax.f32 %v5891_v31, %v2018_v7 }
 0x260   : > { %v6158_v3 = vsel %vm5963_vm10, 0.0, %v2093_v11  ;;  %v3652_v11 = vld [vmem:[%s6683_s3 + $0xb0] sm:$0xff] }
 0x261   : > { %4369 = vmatprep.mubr.msk.f32.mxu1 %vm2165_vm11, %v6158_v3  ;;  %v2020_v29 = vpop.permute.xlu1 %2019 }
 0x262   : > { %v2094_v19 = vmax.f32 %v5899_v32, %v2020_v29  ;;  %v3653_v29 = vld [vmem:[%s6683_s3 + $0xb8] sm:$0xff] }
 0x264   : > { %v6165_v42 = vsel %vm5963_vm10, 0.0, %v2094_v19 }
 0x265   : > { %4370 = vmatmul.mubr.msk.f32.gmra.mrb[68].mxu1 %vm2165_vm11, %v6165_v42  ;;  %v2022_v54 = vpop.permute.xlu0 %2021 }
 0x266   : > { %v2095_v31 = vmax.f32 %v5907_v2, %v2022_v54 }
 0x268   : > { %v6172_v14 = vsel %vm5963_vm10, 0.0, %v2095_v31 }
 0x269   : > { %4372 = vmatprep.mubr.msk.f32.mxu1 %vm2165_vm11, %v6172_v14  ;;  %v2024_v55 = vpop.permute.xlu1 %2023 }
 0x26a   : > { %v2096_v32 = vmax.f32 %v5915_v25, %v2024_v55 }
 0x26c   : > { %v6179_v8 = vsel %vm5963_vm10, 0.0, %v2096_v32 }
 0x26d   : > { %4373 = vmatmul.mubr.msk.f32.gmra.mrb[70].mxu1 %vm2165_vm11, %v6179_v8  ;;  %v2026_v63 = vpop.permute.xlu0 %2025 }
 0x26e   : > { %v2097_v2 = vmax.f32 %v5923_v26, %v2026_v63 }
 0x270   : > { %v6186_v9 = vsel %vm5963_vm10, 0.0, %v2097_v2 }
 0x271   : > { %4375 = vmatprep.mubr.msk.f32.mxu1 %vm2165_vm11, %v6186_v9  ;;  %v2028_v46 = vpop.permute.xlu1 %2027 }
 0x272   : > { %v2098_v25 = vmax.f32 %v5931_v10, %v2028_v46 }
 0x274   : > { %v6193_v58 = vsel %vm5963_vm10, 0.0, %v2098_v25 }
 0x275   : > { %4376 = vmatmul.mubr.msk.f32.gmra.mrb[72].mxu1 %vm2165_vm11, %v6193_v58  ;;  %v2030_v6 = vpop.permute.xlu0 %2029 }
 0x276   : > { %v2099_v26 = vmax.f32 %v5941_v18, %v2030_v6 }
 0x278   : > { %v6200_v20 = vsel %vm5963_vm10, 0.0, %v2099_v26 }
 0x279   : > { %4378 = vmatprep.mubr.msk.f32.mxu1 %vm2165_vm11, %v6200_v20  ;;  %v2032_v13 = vpop.permute.xlu1 %2031 }
 0x27a   : > { %v2100_v10 = vmax.f32 %v5950_v36, %v2032_v13 }
 0x27c   : > { %v6207_v57 = vsel %vm5963_vm10, 0.0, %v2100_v10 }
 0x27d   : > { %4379 = vmatmul.mubr.msk.f32.gmra.mrb[74].mxu1 %vm2165_vm11, %v6207_v57  ;;  %v2034_v16 = vpop.permute.xlu0 %2033 }
 0x27e   : > { %v2101_v18 = vmax.f32 %v5959_v21, %v2034_v16 }
 0x280   : > { %v6214_v50 = vsel %vm5963_vm10, 0.0, %v2101_v18 }
 0x281   : > { %4381 = vmatprep.mubr.msk.f32.mxu1 %vm2165_vm11, %v6214_v50  ;;  %v2036_v5 = vpop.permute.xlu1 %2035 }
 0x282   : > { %v2102_v36 = vmax.f32 %v5972_v59, %v2036_v5 }
 0x284   : > { %v6221_v17 = vsel %vm5963_vm10, 0.0, %v2102_v36 }
 0x285   : > { %4382 = vmatmul.mubr.msk.f32.gmra.mrb[76].mxu1 %vm2165_vm11, %v6221_v17  ;;  %v2038_v48 = vpop.permute.xlu0 %2037 }
 0x286   : > { %v2103_v21 = vmax.f32 %v5993_v43, %v2038_v48  ;;  %v3649_v43 = vld [vmem:[%s6683_s3 + $0x98] sm:$0xff] }
 0x287   : > { %v4569_v27 = vpack.c.bf16 %v3649_v43, %v3648_v12 }
 0x288   : > { %v6228_v62 = vsel %vm5963_vm10, 0.0, %v2103_v21 }
 0x289   : > { %4384 = vmatprep.mubr.msk.f32.mxu1 %vm2165_vm11, %v6228_v62  ;;  %v2040_v22 = vpop.permute.xlu1 %2039 }
 0x28a   : > { %v2104_v59 = vmax.f32 %v6011_v44, %v2040_v22  ;;  %v3651_v44 = vld [vmem:[%s6683_s3 + $0xa8] sm:$0xff] }
 0x28b   : > { %v4573_v7 = vpack.c.bf16 %v3651_v44, %v3650_v60 }
 0x28c   : > { %v6235_v41 = vsel %vm5963_vm10, 0.0, %v2104_v59 }
 0x28d   : > { %4385 = vmatmul.mubr.msk.f32.gmra.mrb[78].mxu1 %vm2165_vm11, %v6235_v41 }
 0x28e   : > { %4403 = vmatprep.mubr.f32.mxu1 %v4889_v4 }
 0x291   : > { %4404 = vmatmul.mubr.msk.f32.vlgmr.msra.gmra.mrb[48].mxu1 %vm2165_vm11, %v5976_v1  ;;  %v4577_v1 = vpack.c.bf16 %v3653_v29, %v3652_v11 }
 0x292   : > { %4568 = vmatpush3.bf16.msra.mxu1 %v6041_v23  ;;  %4406 = vmatprep.mubr.msk.f32.mxu1 %vm2165_vm11, %v5997_v24 }
 0x293   : > { %4570 = vmatprep.subr.bf16.mxu1 %v4569_v27 }
 0x295   : > { %4407 = vmatmul.mubr.msk.f32.gmra.mrb[50].mxu1 %vm2165_vm11, %v6015_v30 }
 0x296   : > { %4409 = vmatprep.mubr.msk.f32.mxu1 %vm2165_vm11, %v6030_v49  ;;  %4572 = vmatpush3.bf16.msra.mxu1 %v4569_v27 }
 0x297   : > { %4574 = vmatprep.subr.bf16.mxu1 %v4573_v7 }
 0x299   : > { %4410 = vmatmul.mubr.msk.f32.gmra.mrb[52].mxu1 %vm2165_vm11, %v6045_v40 }
 0x29a   : > { %4412 = vmatprep.mubr.msk.f32.mxu1 %vm2165_vm11, %v6053_v0  ;;  %4576 = vmatpush3.bf16.msra.mxu1 %v4573_v7 }
 0x29b   : > { %4578 = vmatprep.subr.bf16.mxu1 %v4577_v1 }
 0x29d   : > { %4413 = vmatmul.mubr.msk.f32.gmra.mrb[54].mxu1 %vm2165_vm11, %v6060_v35 }
 0x29e   : > { %4415 = vmatprep.mubr.msk.f32.mxu1 %vm2165_vm11, %v6067_v53  ;;  %4580 = vmatpush3.bf16.msra.mxu1 %v4577_v1 }
 0x2a1   : > { %4416 = vmatmul.mubr.msk.f32.gmra.mrb[56].mxu1 %vm2165_vm11, %v6074_v15 }
 0x2a2   : > { %4418 = vmatprep.mubr.msk.f32.mxu1 %vm2165_vm11, %v6081_v37 }
 0x2a5   : > { %4419 = vmatmul.mubr.msk.f32.gmra.mrb[58].mxu1 %vm2165_vm11, %v6088_v56 }
 0x2a6   : > { %4421 = vmatprep.mubr.msk.f32.mxu1 %vm2165_vm11, %v6095_v45 }
 0x2a9   : > { %4422 = vmatmul.mubr.msk.f32.gmra.mrb[60].mxu1 %vm2165_vm11, %v6102_v47 }
 0x2aa   : > { %4424 = vmatprep.mubr.msk.f32.mxu1 %vm2165_vm11, %v6109_v38 }
 0x2ad   : > { %4425 = vmatmul.mubr.msk.f32.gmra.mrb[62].mxu1 %vm2165_vm11, %v6116_v39 }
 0x2ae   : > { %4427 = vmatprep.mubr.msk.f32.mxu1 %vm2165_vm11, %v6123_v61 }
 0x2b1   : > { %4428 = vmatmul.mubr.msk.f32.gmra.mrb[64].mxu1 %vm2165_vm11, %v6130_v33 }
 0x2b2   : > { %4430 = vmatprep.mubr.msk.f32.mxu1 %vm2165_vm11, %v6137_v51 }
 0x2b5   : > { %4431 = vmatmul.mubr.msk.f32.gmra.mrb[66].mxu1 %vm2165_vm11, %v6144_v52 }
 0x2b6   : > { %4433 = vmatprep.mubr.msk.f32.mxu1 %vm2165_vm11, %v6151_v34 }
 0x2b9   : > { %4434 = vmatmul.mubr.msk.f32.gmra.mrb[68].mxu1 %vm2165_vm11, %v6158_v3 }
 0x2ba   : > { %4436 = vmatprep.mubr.msk.f32.mxu1 %vm2165_vm11, %v6165_v42 }
 0x2bd   : > { %4437 = vmatmul.mubr.msk.f32.gmra.mrb[70].mxu1 %vm2165_vm11, %v6172_v14 }
 0x2be   : > { %4439 = vmatprep.mubr.msk.f32.mxu1 %vm2165_vm11, %v6179_v8 }
 0x2c1   : > { %4440 = vmatmul.mubr.msk.f32.gmra.mrb[72].mxu1 %vm2165_vm11, %v6186_v9 }
 0x2c2   : > { %4442 = vmatprep.mubr.msk.f32.mxu1 %vm2165_vm11, %v6193_v58 }
 0x2c5   : > { %4443 = vmatmul.mubr.msk.f32.gmra.mrb[74].mxu1 %vm2165_vm11, %v6200_v20 }
 0x2c6   : > { %4445 = vmatprep.mubr.msk.f32.mxu1 %vm2165_vm11, %v6207_v57 }
 0x2c9   : > { %4446 = vmatmul.mubr.msk.f32.gmra.mrb[76].mxu1 %vm2165_vm11, %v6214_v50 }
 0x2ca   : > { %4448 = vmatprep.mubr.msk.f32.mxu1 %vm2165_vm11, %v6221_v17 }
 0x2cd   : > { %4449 = vmatmul.mubr.msk.f32.gmra.mrb[78].mxu1 %vm2165_vm11, %v6228_v62 }
 0x2ce   : > { %4467 = vmatprep.mubr.msk.f32.mxu1 %vm2165_vm11, %v5997_v24  ;;  %v6387_v24 = vld [vmem:[%s6684_s4] ss:$0 sm:$0xff] }
 0x2d1   : > { %4468 = vmatmul.mubr.msk.f32.vlgmr.msra.gmra.mrb[48].mxu1 %vm2165_vm11, %v6015_v30 }
 0x2d2   : > { %4470 = vmatprep.mubr.msk.f32.mxu1 %vm2165_vm11, %v6030_v49 }
 0x2d5   : > { %4471 = vmatmul.mubr.msk.f32.gmra.mrb[50].mxu1 %vm2165_vm11, %v6045_v40 }
 0x2d6   : > { %4473 = vmatprep.mubr.msk.f32.mxu1 %vm2165_vm11, %v6053_v0 }
 0x2d9   : > { %4474 = vmatmul.mubr.msk.f32.gmra.mrb[52].mxu1 %vm2165_vm11, %v6060_v35 }
 0x2da   : > { %4476 = vmatprep.mubr.msk.f32.mxu1 %vm2165_vm11, %v6067_v53 }
 0x2dd   : > { %4477 = vmatmul.mubr.msk.f32.gmra.mrb[54].mxu1 %vm2165_vm11, %v6074_v15 }
 0x2de   : > { %4479 = vmatprep.mubr.msk.f32.mxu1 %vm2165_vm11, %v6081_v37 }
 0x2e1   : > { %4480 = vmatmul.mubr.msk.f32.gmra.mrb[56].mxu1 %vm2165_vm11, %v6088_v56 }
 0x2e2   : > { %4482 = vmatprep.mubr.msk.f32.mxu1 %vm2165_vm11, %v6095_v45 }
 0x2e5   : > { %4483 = vmatmul.mubr.msk.f32.gmra.mrb[58].mxu1 %vm2165_vm11, %v6102_v47 }
 0x2e6   : > { %4485 = vmatprep.mubr.msk.f32.mxu1 %vm2165_vm11, %v6109_v38 }
 0x2e9   : > { %4486 = vmatmul.mubr.msk.f32.gmra.mrb[60].mxu1 %vm2165_vm11, %v6116_v39 }
 0x2ea   : > { %4488 = vmatprep.mubr.msk.f32.mxu1 %vm2165_vm11, %v6123_v61 }
 0x2ed   : > { %4489 = vmatmul.mubr.msk.f32.gmra.mrb[62].mxu1 %vm2165_vm11, %v6130_v33 }
 0x2ee   : > { %4491 = vmatprep.mubr.msk.f32.mxu1 %vm2165_vm11, %v6137_v51 }
 0x2f1   : > { %4492 = vmatmul.mubr.msk.f32.gmra.mrb[64].mxu1 %vm2165_vm11, %v6144_v52 }
 0x2f2   : > { %4494 = vmatprep.mubr.msk.f32.mxu1 %vm2165_vm11, %v6151_v34 }
 0x2f5   : > { %4495 = vmatmul.mubr.msk.f32.gmra.mrb[66].mxu1 %vm2165_vm11, %v6158_v3 }
 0x2f6   : > { %4497 = vmatprep.mubr.msk.f32.mxu1 %vm2165_vm11, %v6165_v42 }
 0x2f9   : > { %4498 = vmatmul.mubr.msk.f32.gmra.mrb[68].mxu1 %vm2165_vm11, %v6172_v14 }
 0x2fa   : > { %4500 = vmatprep.mubr.msk.f32.mxu1 %vm2165_vm11, %v6179_v8 }
 0x2fd   : > { %4501 = vmatmul.mubr.msk.f32.gmra.mrb[70].mxu1 %vm2165_vm11, %v6186_v9 }
 0x2fe   : > { %4503 = vmatprep.mubr.msk.f32.mxu1 %vm2165_vm11, %v6193_v58 }
 0x301   : > { %4504 = vmatmul.mubr.msk.f32.gmra.mrb[72].mxu1 %vm2165_vm11, %v6200_v20 }
 0x302   : > { %4506 = vmatprep.mubr.msk.f32.mxu1 %vm2165_vm11, %v6207_v57 }
 0x305   : > { %4507 = vmatmul.mubr.msk.f32.gmra.mrb[74].mxu1 %vm2165_vm11, %v6214_v50 }
 0x306   : > { %4509 = vmatprep.mubr.msk.f32.mxu1 %vm2165_vm11, %v6221_v17 }
 0x309   : > { %4510 = vmatmul.mubr.msk.f32.gmra.mrb[76].mxu1 %vm2165_vm11, %v6228_v62 }
 0x30a   : > { %4512 = vmatprep.mubr.msk.f32.mxu1 %vm2165_vm11, %v6235_v41 }
 0x30d   : > { %4513 = vmatmul.mubr.f32.gmra.mrb[78].mxu1 %v4889_v4 }
 0x3a4   : > { %v4469_v30 = vpop.f32.mrb[48].mxu1 }
 0x3a5   : > { %v2989_v49 = vadd.f32 %v4469_v30, %v6387_v24  ;;  %v2790_v23 = vpop.f32.mrb[49].mxu1 }
 0x3a6   : > { %v2988_v40 = vadd.f32 %v6387_v24, %v2790_v23 }
 0x3a7   : > { %v3021_v0 = vmax.f32 %v2989_v49, 0.0 }
 0x3a8   : > { %v3020_v35 = vmax.f32 %v2988_v40, 0.0  ;;  %v4472_v53 = vpop.f32.mrb[50].mxu1 }
 0x3a9   : > { %v2991_v15 = vadd.f32 %v4472_v53, %v6387_v24  ;;  %v2800_v37 = vpop.f32.mrb[51].mxu1 }
 0x3aa   : > { %v6392_v56 = vmax.f32 %v3020_v35, %v3021_v0  ;;  %v2990_v45 = vadd.f32 %v6387_v24, %v2800_v37 }
 0x3ab   : > { %v3023_v47 = vmax.f32 %v2991_v15, 0.0 }
 0x3ac   : > { %v3022_v38 = vmax.f32 %v2990_v45, 0.0  ;;  %3084 = vrot.lane.b32.xlu0 %v6392_v56, %s4890_s20  ;;  %v4475_v39 = vpop.f32.mrb[52].mxu1 }
 0x3ad   : > { %v2993_v61 = vadd.f32 %v4475_v39, %v6387_v24  ;;  %v2810_v33 = vpop.f32.mrb[53].mxu1 }
 0x3ae   : > { %v6398_v51 = vmax.f32 %v3022_v38, %v3023_v47  ;;  %v2992_v52 = vadd.f32 %v6387_v24, %v2810_v33 }
 0x3af   : > { %v3025_v34 = vmax.f32 %v2993_v61, 0.0 }
 0x3b0   : > { %v3024_v3 = vmax.f32 %v2992_v52, 0.0  ;;  %3086 = vrot.lane.b32.xlu1 %v6398_v51, %s4890_s20  ;;  %v4478_v19 = vpop.f32.mrb[54].mxu1 }
 0x3b1   : > { %v2995_v42 = vadd.f32 %v4478_v19, %v6387_v24  ;;  %v2820_v54 = vpop.f32.mrb[55].mxu1 }
 0x3b2   : > { %v6404_v31 = vmax.f32 %v3024_v3, %v3025_v34  ;;  %v2994_v14 = vadd.f32 %v6387_v24, %v2820_v54 }
 0x3b3   : > { %v3027_v55 = vmax.f32 %v2995_v42, 0.0 }
 0x3b4   : > { %v3026_v32 = vmax.f32 %v2994_v14, 0.0  ;;  %3088 = vrot.lane.b32.xlu0 %v6404_v31, %s4890_s20  ;;  %v4481_v8 = vpop.f32.mrb[56].mxu1 }
 0x3b5   : > { %v2997_v63 = vadd.f32 %v4481_v8, %v6387_v24  ;;  %v2830_v2 = vpop.f32.mrb[57].mxu1 }
 0x3b6   : > { %v6410_v9 = vmax.f32 %v3026_v32, %v3027_v55  ;;  %v2996_v46 = vadd.f32 %v6387_v24, %v2830_v2 }
 0x3b7   : > { %v3029_v25 = vmax.f32 %v2997_v63, 0.0 }
 0x3b8   : > { %v3028_v58 = vmax.f32 %v2996_v46, 0.0  ;;  %3090 = vrot.lane.b32.xlu1 %v6410_v9, %s4890_s20  ;;  %v4484_v6 = vpop.f32.mrb[58].mxu1 }
 0x3b9   : > { %v2999_v26 = vadd.f32 %v4484_v6, %v6387_v24  ;;  %v2840_v20 = vpop.f32.mrb[59].mxu1 }
 0x3ba   : > { %v6416_v13 = vmax.f32 %v3028_v58, %v3029_v25  ;;  %v2998_v10 = vadd.f32 %v6387_v24, %v2840_v20 }
 0x3bb   : > { %v3031_v57 = vmax.f32 %v2999_v26, 0.0 }
 0x3bc   : > { %v3030_v16 = vmax.f32 %v2998_v10, 0.0  ;;  %3092 = vrot.lane.b32.xlu0 %v6416_v13, %s4890_s20  ;;  %v4487_v18 = vpop.f32.mrb[60].mxu1 }
 0x3bd   : > { %v3001_v50 = vadd.f32 %v4487_v18, %v6387_v24  ;;  %v2850_v5 = vpop.f32.mrb[61].mxu1 }
 0x3be   : > { %v6422_v36 = vmax.f32 %v3030_v16, %v3031_v57  ;;  %v3000_v17 = vadd.f32 %v6387_v24, %v2850_v5 }
 0x3bf   : > { %v3033_v48 = vmax.f32 %v3001_v50, 0.0 }
 0x3c0   : > { %v3032_v21 = vmax.f32 %v3000_v17, 0.0  ;;  %3094 = vrot.lane.b32.xlu1 %v6422_v36, %s4890_s20  ;;  %v4490_v62 = vpop.f32.mrb[62].mxu1 }
 0x3c1   : > { %v3003_v22 = vadd.f32 %v4490_v62, %v6387_v24  ;;  %v2860_v59 = vpop.f32.mrb[63].mxu1 }
 0x3c2   : > { %v6428_v41 = vmax.f32 %v3032_v21, %v3033_v48  ;;  %v3002_v12 = vadd.f32 %v6387_v24, %v2860_v59 }
 0x3c3   : > { %v3035_v43 = vmax.f32 %v3003_v22, 0.0 }
 0x3c4   : > { %v3034_v4 = vmax.f32 %v3002_v12, 0.0  ;;  %3096 = vrot.lane.b32.xlu0 %v6428_v41, %s4890_s20  ;;  %v4493_v27 = vpop.f32.mrb[64].mxu1 }
 0x3c5   : > { %v3005_v60 = vadd.f32 %v4493_v27, %v6387_v24  ;;  %v2870_v44 = vpop.f32.mrb[65].mxu1 }
 0x3c6   : > { %v6434_v7 = vmax.f32 %v3034_v4, %v3035_v43  ;;  %v3004_v11 = vadd.f32 %v6387_v24, %v2870_v44 }
 0x3c7   : > { %v3037_v29 = vmax.f32 %v3005_v60, 0.0 }
 0x3c8   : > { %v3036_v1 = vmax.f32 %v3004_v11, 0.0  ;;  %3098 = vrot.lane.b32.xlu1 %v6434_v7, %s4890_s20  ;;  %v4496_v30 = vpop.f32.mrb[66].mxu1 }
 0x3c9   : > { %v3007_v49 = vadd.f32 %v4496_v30, %v6387_v24  ;;  %v2880_v23 = vpop.f32.mrb[67].mxu1  ;;  %v3149_v30 = vld [vmem:[%s6685_s5 + $0x8] sm:$0xff] }
 0x3ca   : > { %v6440_v40 = vmax.f32 %v3036_v1, %v3037_v29  ;;  %v3006_v0 = vadd.f32 %v6387_v24, %v2880_v23  ;;  %v3687_v23 = vld [vmem:[%s6685_s5 + $0x88] sm:$0xff] }
 0x3cb   : > { %v3039_v35 = vmax.f32 %v3007_v49, 0.0 }
 0x3cc   : > { %v3038_v53 = vmax.f32 %v3006_v0, 0.0  ;;  %3100 = vrot.lane.b32.xlu0 %v6440_v40, %s4890_s20  ;;  %v4499_v15 = vpop.f32.mrb[68].mxu1  ;;  %v3148_v0 = vld [vmem:[%s6685_s5] sm:$0xff] }
 0x3cd   : > { %v3009_v37 = vadd.f32 %v4499_v15, %v6387_v24  ;;  %v2890_v45 = vpop.f32.mrb[69].mxu1 }
 0x3ce   : > { %v6446_v47 = vmax.f32 %v3038_v53, %v3039_v35  ;;  %v3008_v38 = vadd.f32 %v6387_v24, %v2890_v45  ;;  %v3686_v35 = vld [vmem:[%s6685_s5 + $0x80] sm:$0xff] }
 0x3cf   : > { %v3041_v39 = vmax.f32 %v3009_v37, 0.0  ;;  %v3688_v37 = vld [vmem:[%s6685_s5 + $0x90] sm:$0xff] }
 0x3d0   : > { %v3040_v61 = vmax.f32 %v3008_v38, 0.0  ;;  %3102 = vrot.lane.b32.xlu1 %v6446_v47, %s4890_s20  ;;  %v4502_v33 = vpop.f32.mrb[70].mxu1 }
 0x3d1   : > { %v3011_v52 = vadd.f32 %v4502_v33, %v6387_v24  ;;  %v2900_v34 = vpop.f32.mrb[71].mxu1 }
 0x3d2   : > { %v6452_v3 = vmax.f32 %v3040_v61, %v3041_v39  ;;  %v3010_v19 = vadd.f32 %v6387_v24, %v2900_v34 }
 0x3d3   : > { %v3043_v42 = vmax.f32 %v3011_v52, 0.0  ;;  %v3689_v52 = vld [vmem:[%s6685_s5 + $0x98] sm:$0xff] }
 0x3d4   : > { %v3042_v54 = vmax.f32 %v3010_v19, 0.0  ;;  %3104 = vrot.lane.b32.xlu0 %v6452_v3, %s4890_s20  ;;  %v4505_v14 = vpop.f32.mrb[72].mxu1 }
 0x3d5   : > { %v3013_v55 = vadd.f32 %v4505_v14, %v6387_v24  ;;  %v2910_v32 = vpop.f32.mrb[73].mxu1 }
 0x3d6   : > { %v6458_v8 = vmax.f32 %v3042_v54, %v3043_v42  ;;  %v3012_v63 = vadd.f32 %v6387_v24, %v2910_v32 }
 0x3d7   : > { %v3045_v2 = vmax.f32 %v3013_v55, 0.0  ;;  %v3690_v55 = vld [vmem:[%s6685_s5 + $0xa0] sm:$0xff] }
 0x3d8   : > { %v3044_v46 = vmax.f32 %v3012_v63, 0.0  ;;  %3106 = vrot.lane.b32.xlu1 %v6458_v8, %s4890_s20  ;;  %v4508_v25 = vpop.f32.mrb[74].mxu1 }
 0x3d9   : > { %v3015_v58 = vadd.f32 %v4508_v25, %v6387_v24  ;;  %v2920_v6 = vpop.f32.mrb[75].mxu1 }
 0x3da   : > { %v6464_v26 = vmax.f32 %v3044_v46, %v3045_v2  ;;  %v3014_v20 = vadd.f32 %v6387_v24, %v2920_v6 }
 0x3db   : > { %v3047_v10 = vmax.f32 %v3015_v58, 0.0 }
 0x3dc   : > { %v3046_v57 = vmax.f32 %v3014_v20, 0.0  ;;  %3108 = vrot.lane.b32.xlu0 %v6464_v26, %s4890_s20  ;;  %v4511_v16 = vpop.f32.mrb[76].mxu1  ;;  %v3153_v20 = vld [vmem:[%s6685_s5 + $0x28] sm:$0xff] }
 0x3dd   : > { %v3017_v18 = vadd.f32 %v4511_v16, %v6387_v24  ;;  %v2930_v50 = vpop.f32.mrb[77].mxu1 }
 0x3de   : > { %v6470_v5 = vmax.f32 %v3046_v57, %v3047_v10  ;;  %v3016_v17 = vadd.f32 %v6387_v24, %v2930_v50  ;;  %v3691_v10 = vld [vmem:[%s6685_s5 + $0xa8] sm:$0xff] }
 0x3df   : > { %v3049_v48 = vmax.f32 %v3017_v18, 0.0 }
 0x3e0   : > { %v3048_v21 = vmax.f32 %v3016_v17, 0.0  ;;  %3110 = vrot.lane.b32.xlu1 %v6470_v5, %s4890_s20  ;;  %v4514_v62 = vpop.f32.mrb[78].mxu1 }
 0x3e1   : > { %v3019_v22 = vadd.f32 %v4514_v62, %v6387_v24  ;;  %v2940_v59 = vpop.f32.mrb[79].mxu1  ;;  %v3692_v62 = vld [vmem:[%s6685_s5 + $0xb0] sm:$0xff] }
 0x3e2   : > { %v6476_v12 = vmax.f32 %v3048_v21, %v3049_v48  ;;  %v3018_v43 = vadd.f32 %v6387_v24, %v2940_v59  ;;  %v3154_v21 = vld [vmem:[%s6685_s5 + $0x30] sm:$0xff] }
 0x3e3   : > { %v3051_v4 = vmax.f32 %v3019_v22, 0.0 }
 0x3e4   : > { %v3050_v27 = vmax.f32 %v3018_v43, 0.0  ;;  %3112 = vrot.lane.b32.xlu0 %v6476_v12, %s4890_s20 }
 0x3e6   : > { %v6481_v60 = vmax.f32 %v3050_v27, %v3051_v4 }
 0x3e8   : > { %3114 = vrot.lane.b32.xlu1 %v6481_v60, %s4890_s20 }
 0x41e   : > { %v3085_v44 = vpop.permute.xlu0 %3084 }
 0x41f   : > { %v3132_v49 = vmax.f32 %v6392_v56, %v3085_v44  ;;  %v3150_v56 = vld [vmem:[%s6685_s5 + $0x10] sm:$0xff] }
 0x421   : > { %v3164_v61 = vmul.f32 %v3148_v0, %v3132_v49  ;;  %v3238_v33 = vmul.f32 %v3686_v35, %v3132_v49 }
 0x422   : > { %v3087_v11 = vpop.permute.xlu1 %3086 }
 0x423   : > { %v3133_v1 = vmax.f32 %v6398_v51, %v3087_v11  ;;  %v3181_v25 = vsel %vm3180_vm12, %v3164_v61, 0.0  ;;  %v3254_v58 = vsel %vm3180_vm12, %v3238_v33, 0.0  ;;  %v3157_v33 = vld [vmem:[%s6685_s5 + $0x48] sm:$0xff] }
 0x425   : > { %v3165_v15 = vmul.f32 %v3149_v30, %v3133_v1  ;;  %v3239_v45 = vmul.f32 %v3687_v23, %v3133_v1  ;;  %v3693_v1 = vld [vmem:[%s6685_s5 + $0xb8] sm:$0xff] }
 0x426   : > { %v3089_v29 = vpop.permute.xlu0 %3088 }
 0x427   : > { %v3134_v51 = vmax.f32 %v6404_v31, %v3089_v29  ;;  %v3151_v31 = vld [vmem:[%s6685_s5 + $0x18] sm:$0xff]  ;;  %v3182_v14 = vsel %vm3180_vm12, %v3165_v15, 0.0  ;;  %v3255_v32 = vsel %vm3180_vm12, %v3239_v45, 0.0  ;;  %v3156_v15 = vld [vmem:[%s6685_s5 + $0x40] sm:$0xff] }
 0x428   : > { %v3183_v17 = vadd.f32 %v3182_v14, %v3181_v25  ;;  %v3256_v48 = vadd.f32 %v3255_v32, %v3254_v58 }
 0x429   : > { %v3166_v19 = vmul.f32 %v3150_v56, %v3134_v51  ;;  %v3240_v42 = vmul.f32 %v3688_v37, %v3134_v51  ;;  %v3694_v56 = vld [vmem:[%s6685_s5 + $0xc0] sm:$0xff] }
 0x42a   : > { %v3091_v24 = vpop.permute.xlu1 %3090 }
 0x42b   : > { %v3135_v38 = vmax.f32 %v6410_v9, %v3091_v24  ;;  %v3152_v9 = vld [vmem:[%s6685_s5 + $0x20] sm:$0xff]  ;;  %v3184_v57 = vsel %vm3180_vm12, %v3166_v19, 0.0  ;;  %v3257_v16 = vsel %vm3180_vm12, %v3240_v42, 0.0 }
 0x42c   : > { %v3185_v44 = vadd.f32 %v3184_v57, %v3183_v17  ;;  %v3258_v11 = vadd.f32 %v3257_v16, %v3256_v48  ;;  %v3160_v48 = vld [vmem:[%s6685_s5 + $0x60] sm:$0xff] }
 0x42d   : > { %v3167_v63 = vmul.f32 %v3151_v31, %v3135_v38  ;;  %v3241_v2 = vmul.f32 %v3689_v52, %v3135_v38  ;;  %v3695_v31 = vld [vmem:[%s6685_s5 + $0xc8] sm:$0xff] }
 0x42e   : > { %v3093_v53 = vpop.permute.xlu0 %3092 }
 0x42f   : > { %v3136_v34 = vmax.f32 %v6416_v13, %v3093_v53  ;;  %v3186_v59 = vsel %vm3180_vm12, %v3167_v63, 0.0  ;;  %v3259_v43 = vsel %vm3180_vm12, %v3241_v2, 0.0  ;;  %v3696_v63 = vld [vmem:[%s6685_s5 + $0xd0] sm:$0xff] }
 0x430   : > { %v3187_v35 = vadd.f32 %v3186_v59, %v3185_v44  ;;  %v3260_v51 = vadd.f32 %v3259_v43, %v3258_v11  ;;  %v3699_v44 = vld [vmem:[%s6685_s5 + $0xe8] sm:$0xff] }
 0x431   : > { %v3168_v6 = vmul.f32 %v3152_v9, %v3136_v34  ;;  %v3242_v18 = vmul.f32 %v3690_v55, %v3136_v34 }
 0x432   : > { %v3095_v39 = vpop.permute.xlu1 %3094 }
 0x433   : > { %v3137_v13 = vmax.f32 %v6422_v36, %v3095_v39  ;;  %v3188_v29 = vsel %vm3180_vm12, %v3168_v6, 0.0 }
 0x435   : > { %v3169_v4 = vmul.f32 %v3153_v20, %v3137_v13  ;;  %v3243_v27 = vmul.f32 %v3691_v10, %v3137_v13  ;;  %v3159_v20 = vld [vmem:[%s6685_s5 + $0x58] sm:$0xff] }
 0x436   : > { %v3097_v54 = vpop.permute.xlu0 %3096  ;;  %v3697_v10 = vld [vmem:[%s6685_s5 + $0xd8] sm:$0xff] }
 0x437   : > { %v3138_v36 = vmax.f32 %v6428_v41, %v3097_v54  ;;  %v3155_v41 = vld [vmem:[%s6685_s5 + $0x38] sm:$0xff]  ;;  %v3190_v37 = vsel %vm3180_vm12, %v3169_v4, 0.0  ;;  %v3263_v45 = vsel %vm3180_vm12, %v3243_v27, 0.0 }
 0x439   : > { %v3170_v24 = vmul.f32 %v3154_v21, %v3138_v36  ;;  %v3244_v49 = vmul.f32 %v3692_v62, %v3138_v36  ;;  %v3698_v21 = vld [vmem:[%s6685_s5 + $0xe0] sm:$0xff] }
 0x43a   : > { %v3099_v46 = vpop.permute.xlu1 %3098 }
 0x43b   : > { %v3139_v22 = vmax.f32 %v6434_v7, %v3099_v46  ;;  %v3261_v7 = vsel %vm3180_vm12, %v3242_v18, 0.0  ;;  %v3192_v19 = vsel %vm3180_vm12, %v3170_v24, 0.0  ;;  %v3265_v42 = vsel %vm3180_vm12, %v3244_v49, 0.0 }
 0x43c   : > { %v3262_v61 = vadd.f32 %v3261_v7, %v3260_v51 }
 0x43d   : > { %v3171_v53 = vmul.f32 %v3155_v41, %v3139_v22  ;;  %v3245_v38 = vmul.f32 %v3693_v1, %v3139_v22  ;;  %v3161_v41 = vld [vmem:[%s6685_s5 + $0x68] sm:$0xff] }
 0x43e   : > { %v3101_v50 = vpop.permute.xlu0 %3100  ;;  %v3264_v55 = vadd.f32 %v3263_v45, %v3262_v61 }
 0x43f   : > { %v3140_v23 = vmax.f32 %v6440_v40, %v3101_v50  ;;  %v3189_v40 = vadd.f32 %v3188_v29, %v3187_v35  ;;  %v3194_v32 = vsel %vm3180_vm12, %v3171_v53, 0.0 }
 0x440   : > { %v3266_v58 = vadd.f32 %v3265_v42, %v3264_v55 }
 0x441   : > { %v3172_v9 = vmul.f32 %v3156_v15, %v3140_v23  ;;  %v3246_v54 = vmul.f32 %v3694_v56, %v3140_v23  ;;  %v3191_v14 = vadd.f32 %v3190_v37, %v3189_v40  ;;  %v3162_v56 = vld [vmem:[%s6685_s5 + $0x70] sm:$0xff] }
 0x442   : > { %v3103_v30 = vpop.permute.xlu1 %3102  ;;  %v3700_v37 = vld [vmem:[%s6685_s5 + $0xf0] sm:$0xff] }
 0x443   : > { %v3141_v39 = vmax.f32 %v6446_v47, %v3103_v30  ;;  %v3158_v47 = vld [vmem:[%s6685_s5 + $0x50] sm:$0xff]  ;;  %v3193_v25 = vadd.f32 %v3192_v19, %v3191_v14  ;;  %v3196_v16 = vsel %vm3180_vm12, %v3172_v9, 0.0  ;;  %v3269_v18 = vsel %vm3180_vm12, %v3246_v54, 0.0  ;;  %v3163_v9 = vld [vmem:[%s6685_s5 + $0x78] sm:$0xff] }
 0x444   : > { %v3701_v54 = vld [vmem:[%s6685_s5 + $0xf8] sm:$0xff] }
 0x445   : > { %v3173_v2 = vmul.f32 %v3157_v33, %v3141_v39  ;;  %v3247_v13 = vmul.f32 %v3695_v31, %v3141_v39 }
 0x446   : > { %v3105_v0 = vpop.permute.xlu0 %3104 }
 0x447   : > { %v3142_v52 = vmax.f32 %v6452_v3, %v3105_v0  ;;  %v3267_v3 = vsel %vm3180_vm12, %v3245_v38, 0.0  ;;  %v3198_v62 = vsel %vm3180_vm12, %v3173_v2, 0.0  ;;  %v3271_v22 = vsel %vm3180_vm12, %v3247_v13, 0.0 }
 0x448   : > { %v3268_v17 = vadd.f32 %v3267_v3, %v3266_v58 }
 0x449   : > { %v3174_v6 = vmul.f32 %v3158_v47, %v3142_v52  ;;  %v3248_v36 = vmul.f32 %v3696_v63, %v3142_v52 }
 0x44a   : > { %v3107_v34 = vpop.permute.xlu1 %3106  ;;  %v3270_v27 = vadd.f32 %v3269_v18, %v3268_v17 }
 0x44b   : > { %v3143_v46 = vmax.f32 %v6458_v8, %v3107_v34  ;;  %v3195_v8 = vadd.f32 %v3194_v32, %v3193_v25  ;;  %v3273_v29 = vsel %vm3180_vm12, %v3248_v36, 0.0 }
 0x44c   : > { %v3272_v49 = vadd.f32 %v3271_v22, %v3270_v27 }
 0x44d   : > { %v3175_v59 = vmul.f32 %v3159_v20, %v3143_v46  ;;  %v3249_v43 = vmul.f32 %v3697_v10, %v3143_v46  ;;  %v3197_v4 = vadd.f32 %v3196_v16, %v3195_v8 }
 0x44e   : > { %v3109_v57 = vpop.permute.xlu0 %3108  ;;  %v3274_v15 = vadd.f32 %v3273_v29, %v3272_v49 }
 0x44f   : > { %v3144_v50 = vmax.f32 %v6464_v26, %v3109_v57  ;;  %v3200_v26 = vsel %vm3180_vm12, %v3174_v6, 0.0  ;;  %v3199_v24 = vadd.f32 %v3198_v62, %v3197_v4  ;;  %v3202_v23 = vsel %vm3180_vm12, %v3175_v59, 0.0  ;;  %v3298_v4 = vld [vmem:[%s6686_s6] sm:$0x1] }
 0x450   : > { %v3275_v0 = vsel %vm3180_vm12, %v3249_v43, 0.0 }
 0x451   : > { %v3176_v1 = vmul.f32 %v3160_v48, %v3144_v50  ;;  %v3250_v30 = vmul.f32 %v3698_v21, %v3144_v50  ;;  %v3201_v53 = vadd.f32 %v3200_v26, %v3199_v24  ;;  %v3276_v61 = vadd.f32 %v3275_v0, %v3274_v15 }
 0x452   : > { %v3111_v11 = vpop.permute.xlu1 %3110 }
 0x453   : > { %v3145_v7 = vmax.f32 %v6470_v5, %v3111_v11  ;;  %v3204_v5 = vsel %vm3180_vm12, %v3176_v1, 0.0  ;;  %v3277_v38 = vsel %vm3180_vm12, %v3250_v30, 0.0  ;;  %v3203_v40 = vadd.f32 %v3202_v23, %v3201_v53 }
 0x454   : > { %v3278_v42 = vadd.f32 %v3277_v38, %v3276_v61 }
 0x455   : > { %v3177_v35 = vmul.f32 %v3161_v41, %v3145_v7  ;;  %v3251_v51 = vmul.f32 %v3699_v44, %v3145_v7  ;;  %v3205_v19 = vadd.f32 %v3204_v5, %v3203_v40 }
 0x456   : > { %v3113_v45 = vpop.permute.xlu0 %3112 }
 0x457   : > { %v3146_v39 = vmax.f32 %v6476_v12, %v3113_v45  ;;  %v3206_v33 = vsel %vm3180_vm12, %v3177_v35, 0.0  ;;  %v3279_v31 = vsel %vm3180_vm12, %v3251_v51, 0.0 }
 0x458   : > { %v3280_v32 = vadd.f32 %v3279_v31, %v3278_v42  ;;  %v3207_v63 = vadd.f32 %v3206_v33, %v3205_v19 }
 0x459   : > { %v3178_v52 = vmul.f32 %v3162_v56, %v3146_v39  ;;  %v3252_v34 = vmul.f32 %v3700_v37, %v3146_v39 }
 0x45a   : > { %v3115_v47 = vpop.permute.xlu1 %3114 }
 0x45b   : > { %v3147_v12 = vmax.f32 %v6481_v60, %v3115_v47  ;;  %v3281_v14 = vsel %vm3180_vm12, %v3252_v34, 0.0  ;;  %v3208_v55 = vsel %vm3180_vm12, %v3178_v52, 0.0 }
 0x45c   : > { %v3282_v13 = vadd.f32 %v3281_v14, %v3280_v32  ;;  %v3209_v46 = vadd.f32 %v3208_v55, %v3207_v63 }
 0x45d   : > { %v3179_v3 = vmul.f32 %v3163_v9, %v3147_v12  ;;  %v3253_v2 = vmul.f32 %v3701_v54, %v3147_v12 }
 0x45f   : > { %v3283_v25 = vsel %vm3180_vm12, %v3253_v2, 0.0  ;;  %v3210_v58 = vsel %vm3180_vm12, %v3179_v3, 0.0 }
 0x460   : > { %v3284_v6 = vadd.f32 %v3283_v25, %v3282_v13  ;;  %v3211_v20 = vadd.f32 %v3210_v58, %v3209_v46 }
 0x462   : > { %3285 = vadd.xlane.f32.xlu1 %v3284_v6  ;;  %3212 = vadd.xlane.f32.xlu0 %v3211_v20 }
 0x4ef   : > { %v3286_v10 = vpop.xlane.xlu1 %3285  ;;  %v3213_v60 = vpop.xlane.xlu0 %3212 }
 0x4f0   : > { %v3287_v57 = vrot.slane %v3286_v10, 4  ;;  %v3214_v16 = vrot.slane %v3213_v60, 4 }
 0x4f2   : > { %v3288_v18 = vadd.f32 %v3287_v57, %v3286_v10  ;;  %v3215_v36 = vadd.f32 %v3214_v16, %v3213_v60 }
 0x4f4   : > { %v3289_v50 = vrot.slane %v3288_v18, 2  ;;  %v3216_v8 = vrot.slane %v3215_v36, 2 }
 0x4f6   : > { %v3290_v17 = vadd.f32 %v3289_v50, %v3288_v18  ;;  %v3217_v48 = vadd.f32 %v3216_v8, %v3215_v36 }
 0x4f8   : > { %v3218_v21 = vrot.slane %v3217_v48, 1  ;;  %v3291_v62 = vrot.slane %v3290_v17, 1 }
 0x4fa   : > { %v3219_v22 = vadd.f32 %v3218_v21, %v3217_v48  ;;  %v3292_v59 = vadd.f32 %v3291_v62, %v3290_v17 }
 0x4fc   : > { %4776 = vpush %v3219_v22 }
 0x4fd   : > { %4778 = vpush %v3292_v59 }
 0x52d   : > { %s4777_s29 = spop %4776 }
 0x52e   : > { %v3295_v43 = vstv %s4777_s29  ;;  %s4779_s9 = spop %4778  ;;  %s4829_s29 = scalar_lea.vmem %s4828_s22, 32 }
 0x52f   : > { %v3296_v27 = vstv %s4779_s9  ;;  %p4831_p1 = scmp.lt.s32.totalorder %s4829_s29, %s4823_s19 }
 0x530   : > { %v3297_v26 = vsel %vm3294_vm13, %v3295_v43, %v3296_v27 }
 0x531   : > { %v3299_v41 = vadd.f32 %v3298_v4, %v3297_v26  ;;  %p4832_p2 = por %p4831_p1, %p4830_p0 }
 0x533   : > { %3301 = vst.msk [vmem:[%s270_s14] sm:$0x1] %vm3300_vm14, %v3299_v41  ;;  %p4833_p3 = pnand %p4832_p2, %p4826_p13 }
 0x535   : > { %4836 = shalt.err (!%p4833_p3)
}
 0x536   : > { %s4837_s23 = scalar_lea.hbm %s6638_s18, 16  ;;  %s4841_s13 = scalar_lea.hbm %s6687_s7, 32 }
 0x537   : > { %p4838_p4 = scmp.ne.s32.totalorder %s6638_s18, %s4837_s23  ;;  %p4842_p9 = scmp.lt.u32.totalorder %s6638_s18, %s6687_s7 }
 0x538   : > { %p4843_p10 = scmp.lt.u32.totalorder %s4841_s13, %s4837_s23  ;;  %p4845_p12 = scmp.lt.u32.totalorder %s4837_s23, %s6638_s18 }
 0x539   : > { %p4839_p7 = pnand %p4838_p4, %p4970_p5 }
 0x53a   : > { %p4844_p11 = por %p4843_p10, %p4842_p9 }
 0x53b   : > { %p4840_p8 = pneg %p4839_p7 }
 0x53c   : > { %p4846_p13 = por %p4845_p12, %p4844_p11 }
 0x53e   : > { %p4847_p0 = pnand %p4846_p13, %p4840_p8 }
 0x540   : > { %4850 = shalt.err (!%p4847_p0)
}
 0x541   : > { %4780 = dma.vmem_to_hbm [thread:$0]  (%p4970_p5), %s6640_s15, 16, %s6638_s18, %s3303_s28  }
 0x542 PF: > { %p4786_p1 = scmp.ge.s32.totalorder %s4885_s27, 2  ;;  %s3327_s16 = sand.u32 1, %s4873_s24  }
 0x543   : > { %s3328_s17 = scalar_lea.sflag [#allocation3], %s3327_s16 }
 0x544   : > { %p4783_p2 = pnand %p4786_p1, %p4974_p6 }
 0x546   : > { %4868 = dma.done.wait (!%p4783_p2), %s3328_s17, 16  }
 0x547   : > { %4870 = vsyncadd (!%p4783_p2), %s3328_s17, 4294967280  ;;  %p17_p3 = scmp.ge.s32.totalorder %s4957_s30, 4   ;;  %s6714_s24 = smov %s4877_s25 }
 0x548   : > { %s6715_s25 = smov %s4881_s26  ;;  %s6716_s26 = smov %s4968_s10 }
 0x549   : > { %s6717_s27 = smov %s4957_s30  ;;  %19 = sbr.rel (!%p17_p3) target bundleno = 3 (0x3), region = 88 }
 0x550   :  { %3332 = vsyncpa [#allocation3], 1 }
 0x551   :  { %3334 = vsyncpa [#allocation3 + $0x1], 1 }

</bundles_post_ra>
